<compile_context>
chip_gen: v5e
topology: v5e:2x2
jax: 0.10.0
libtpu: 0.0.40
codegen_flags: <defaults>
</compile_context>

<pallas_src>
import functools
import math

import jax
import jax.numpy as jnp
from jax import lax
from jax.experimental import pallas as pl
from jax.experimental.pallas import tpu as pltpu


# ---------------------------------------------------------------------------
# Fused encoder kernel: all layers, all batch elements, + final masked avg-pool
# ---------------------------------------------------------------------------
def _fused_encoder_kernel(x_ref, bias_ref, pool_ref,
                          wqkv_ref, bqkv_ref, wo_ref, vecs_ref,
                          w1_ref, b1_ref, w2_ref,
                          out_ref, x_scr, *, n_heads):
    layer = pl.program_id(0)

    # Load the (pos-encoded) input into the resident VMEM activation on layer 0.
    @pl.when(layer == 0)
    def _load_input():
        x_scr[...] = x_ref[...]

    x = x_scr[...]                                   # (M, D) f32, M = B*S
    M, D = x.shape
    dh = D // n_heads
    scale = 1.0 / math.sqrt(dh)

    bias = bias_ref[...]                             # (M, M) additive attn bias
    vecs = vecs_ref[0]                               # (6, D) f32 packed vectors
    bo, b2 = vecs[0:1, :], vecs[1:2, :]
    ln1w, ln1b = vecs[2:3, :], vecs[3:4, :]
    ln2w, ln2b = vecs[4:5, :], vecs[5:6, :]

    # ---- fused QKV projection (bf16 MXU operands, f32 accumulate) ----
    xb = x.astype(jnp.bfloat16)
    qkv = jnp.dot(xb, wqkv_ref[0],
                  preferred_element_type=jnp.float32) + bqkv_ref[0]   # (M, 3D)
    q = qkv[:, 0 * D:1 * D] * scale
    k = qkv[:, 1 * D:2 * D]
    v = qkv[:, 2 * D:3 * D]

    # ---- multi-head self-attention; fold Wo into a per-head accumulation ----
    attn = jnp.zeros((M, D), jnp.float32)
    for h in range(n_heads):                         # static unroll (n_heads small)
        sl = slice(h * dh, (h + 1) * dh)
        qh = q[:, sl].astype(jnp.bfloat16)
        kh = k[:, sl].astype(jnp.bfloat16)
        vh = v[:, sl].astype(jnp.bfloat16)
        # scores: q . k  (contract head dim) -> (M, M); block-diagonal + key mask
        s = lax.dot_general(qh, kh, (((1,), (1,)), ((), ())),
                            preferred_element_type=jnp.float32)
        s = s + bias
        s = s - jnp.max(s, axis=-1, keepdims=True)
        p = jnp.exp(s)
        p = p * pl.reciprocal(jnp.sum(p, axis=-1, keepdims=True), approx=True)
        ctx = jnp.dot(p.astype(jnp.bfloat16), vh,
                      preferred_element_type=jnp.float32)             # (M, dh)
        attn = attn + jnp.dot(ctx.astype(jnp.bfloat16), wo_ref[0, h],
                              preferred_element_type=jnp.float32)     # (M, D)
    attn = attn + bo

    # ---- residual + LayerNorm1 (post-norm, dropout = identity) ----
    x = x + attn
    mu = jnp.mean(x, axis=-1, keepdims=True)
    xc = x - mu
    var = jnp.mean(xc * xc, axis=-1, keepdims=True)
    x = xc * lax.rsqrt(var + 1e-5) * ln1w + ln1b

    # ---- feed-forward (ReLU) + residual + LayerNorm2 ----
    h1 = jnp.dot(x.astype(jnp.bfloat16), w1_ref[0],
                 preferred_element_type=jnp.float32) + b1_ref[0]
    h1 = jnp.maximum(h1, 0.0)
    y = jnp.dot(h1.astype(jnp.bfloat16), w2_ref[0],
                preferred_element_type=jnp.float32) + b2
    x = x + y
    mu = jnp.mean(x, axis=-1, keepdims=True)
    xc = x - mu
    var = jnp.mean(xc * xc, axis=-1, keepdims=True)
    x = xc * lax.rsqrt(var + 1e-5) * ln2w + ln2b

    x_scr[...] = x

    # ---- masked average pool, fused into the last layer step ----
    @pl.when(layer == pl.num_programs(0) - 1)
    def _finalize():
        # pool_ref is (B, M) with pool[b, b*S+s] = valid[b,s] / (len[b] + eps)
        out_ref[...] = jnp.dot(pool_ref[...], x, preferred_element_type=jnp.float32)


def single_transformer_encoder(feat, ignore_mask, pos_weight, params, n_heads):
    """feat: (B, S, D) f32; ignore_mask: (B, S) bool (True = padding)."""
    B, S, D = feat.shape
    L = params["w_qkv"].shape[0]
    dff = params["w1"].shape[-1]
    M = B * S
    dh = D // n_heads

    # LearnedPositionalEncoding (dropout = identity at inference); fold batch into M.
    x = (feat + pos_weight[:S][None, :, :]).reshape(M, D).astype(jnp.float32)

    # Additive attention bias: 0 where (same batch element AND key is valid), else -1e30.
    # (PyTorch's -inf key_padding_mask gives NaN for fully-masked rows; -1e30 gives a
    #  uniform distribution instead — documented semantic divergence.)
    row_b = jnp.arange(M)[:, None] // S
    col_b = jnp.arange(M)[None, :] // S
    key_valid = jnp.logical_not(ignore_mask).reshape(M)
    bias = jnp.where((row_b == col_b) & key_valid[None, :],
                     0.0, -1e30).astype(jnp.float32)                     # (M, M)

    # Masked mean pooling expressed as a (B, M) @ (M, D) matmul.
    valid = jnp.logical_not(ignore_mask).astype(jnp.float32)             # (B, S)
    length = valid.sum(-1, keepdims=True)
    pool_w = valid / (length + 1e-12)                                     # (B, S)
    pool_mat = (jnp.eye(B, dtype=jnp.float32)[:, :, None]
                * pool_w[None, :, :]).reshape(B, M)                       # (B, M)

    kernel = functools.partial(_fused_encoder_kernel, n_heads=n_heads)
    out = pl.pallas_call(
        kernel,
        grid=(L,),
        in_specs=[
            pl.BlockSpec((M, D), lambda l: (0, 0)),                # x (read at l==0)
            pl.BlockSpec((M, M), lambda l: (0, 0)),                # attention bias
            pl.BlockSpec((B, M), lambda l: (0, 0)),                # pooling matrix
            pl.BlockSpec((1, D, 3 * D), lambda l: (l, 0, 0)),      # fused Wqkv (bf16)
            pl.BlockSpec((1, 1, 3 * D), lambda l: (l, 0, 0)),      # bqkv (f32)
            pl.BlockSpec((1, n_heads, dh, D), lambda l: (l, 0, 0, 0)),  # Wo per head
            pl.BlockSpec((1, 6, D), lambda l: (l, 0, 0)),          # packed bias/LN vecs
            pl.BlockSpec((1, D, dff), lambda l: (l, 0, 0)),        # W1 (bf16)
            pl.BlockSpec((1, 1, dff), lambda l: (l, 0, 0)),        # b1 (f32)
            pl.BlockSpec((1, dff, D), lambda l: (l, 0, 0)),        # W2 (bf16)
        ],
        out_specs=pl.BlockSpec((B, D), lambda l: (0, 0)),
        out_shape=jax.ShapeDtypeStruct((B, D), jnp.float32),
        scratch_shapes=[pltpu.VMEM((M, D), jnp.float32)],          # resident activation
        compiler_params=pltpu.CompilerParams(
            dimension_semantics=("arbitrary",)),
    )(x, bias, pool_mat,
      params["w_qkv"], params["b_qkv"], params["wo"], params["vecs"],
      params["w1"], params["b1"], params["w2"])
    return out


# ---------------------------------------------------------------------------
# Parameter init (deterministic, synthetic), stacked per layer for the fused kernel
# ---------------------------------------------------------------------------
def init_params(key, dim, n_layers, n_heads, dff=2048, num_embeddings=50):
    dh = dim // n_heads
    keys = jax.random.split(key, 1 + n_layers)
    std_pos = math.sqrt(2.0 / (num_embeddings + dim))       # xavier_normal
    pos = jax.random.normal(keys[0], (num_embeddings, dim), jnp.float32) * std_pos

    w_qkv, b_qkv, wo, vecs, w1, b1, w2 = [], [], [], [], [], [], []
    for l in range(n_layers):
        lk = jax.random.split(keys[1 + l], 6)
        wq = jax.random.normal(lk[0], (dim, dim), jnp.float32) * 0.05
        wk = jax.random.normal(lk[1], (dim, dim), jnp.float32) * 0.05
        wv = jax.random.normal(lk[2], (dim, dim), jnp.float32) * 0.05
        w_qkv.append(jnp.concatenate([wq, wk, wv], axis=-1))              # (D, 3D)
        b_qkv.append(jnp.zeros((1, 3 * dim), jnp.float32))
        wol = jax.random.normal(lk[3], (dim, dim), jnp.float32) * 0.05
        wo.append(wol.reshape(n_heads, dh, dim))                          # (H, dh, D)
        vecs.append(jnp.stack([
            jnp.zeros((dim,), jnp.float32),   # bo
            jnp.zeros((dim,), jnp.float32),   # b2
            jnp.ones((dim,), jnp.float32),    # ln1 weight
            jnp.zeros((dim,), jnp.float32),   # ln1 bias
            jnp.ones((dim,), jnp.float32),    # ln2 weight
            jnp.zeros((dim,), jnp.float32),   # ln2 bias
        ], axis=0))                                                        # (6, D)
        w1.append(jax.random.normal(lk[4], (dim, dff), jnp.float32) * 0.02)
        b1.append(jnp.zeros((1, dff), jnp.float32))
        w2.append(jax.random.normal(lk[5], (dff, dim), jnp.float32) * 0.02)

    params = dict(
        w_qkv=jnp.stack(w_qkv).astype(jnp.bfloat16),   # (L, D, 3D)   bf16 MXU operand
        b_qkv=jnp.stack(b_qkv),                        # (L, 1, 3D)   f32
        wo=jnp.stack(wo).astype(jnp.bfloat16),         # (L, H, dh, D) bf16
        vecs=jnp.stack(vecs),                          # (L, 6, D)    f32
        w1=jnp.stack(w1).astype(jnp.bfloat16),         # (L, D, dff)  bf16
        b1=jnp.stack(b1),                              # (L, 1, dff)  f32
        w2=jnp.stack(w2).astype(jnp.bfloat16),         # (L, dff, D)  bf16
    )
    return pos, params


if __name__ == "__main__":
    B, S, D, H, L = 2, 8, 32, 4, 2        # batch, seq, hidden, heads, layers
    key = jax.random.PRNGKey(0)
    k_feat, k_params = jax.random.split(key)

    feat = jax.random.normal(k_feat, (B, S, D), jnp.float32)
    lengths = jnp.array([S, S - 3])
    ignore_mask = jnp.arange(S)[None, :] >= lengths[:, None]   # True = padding/ignore

    pos_weight, params = init_params(k_params, D, L, H)
    out = single_transformer_encoder(feat, ignore_mask, pos_weight, params, H)
    out = jax.block_until_ready(out)
    assert out.shape == (B, D) and bool(jnp.all(jnp.isfinite(out)))
    # TODO(synk): dropout layers are treated as identity (inference mode); no Pallas RNG needed.
    print("KERNEL_OK")
</pallas_src>

<mosaic_0001>
module attributes {stable_mosaic.version = 11 : i64} {
  func.func @_fused_encoder_kernel(%arg0: i32, %arg1: memref<16x32xf32, #tpu.memory_space<vmem>>, %arg2: memref<16x16xf32, #tpu.memory_space<vmem>>, %arg3: memref<2x16xf32, #tpu.memory_space<vmem>>, %arg4: memref<1x32x96xbf16, #tpu.memory_space<vmem>>, %arg5: memref<1x1x96xf32, #tpu.memory_space<vmem>>, %arg6: memref<1x4x8x32xbf16, #tpu.memory_space<vmem>>, %arg7: memref<1x6x32xf32, #tpu.memory_space<vmem>>, %arg8: memref<1x32x2048xbf16, #tpu.memory_space<vmem>>, %arg9: memref<1x1x2048xf32, #tpu.memory_space<vmem>>, %arg10: memref<1x2048x32xbf16, #tpu.memory_space<vmem>>, %arg11: memref<2x32xf32, #tpu.memory_space<vmem>>, %arg12: memref<16x32xf32, #tpu.memory_space<vmem>>) attributes {dimension_semantics = [#tpu.dimension_semantics<arbitrary>], iteration_bounds = array<i64: 2>, scalar_prefetch = 0 : i64, scratch_operands = 1 : i64, tpu.core_type = #tpu.core_type<tc>, window_params = [{pipeline_mode = #tpu.pipeline_mode<synchronous>, transform_indices = @transform_0, window_bounds = array<i64: 16, 32>}, {pipeline_mode = #tpu.pipeline_mode<synchronous>, transform_indices = @transform_1, window_bounds = array<i64: 16, 16>}, {pipeline_mode = #tpu.pipeline_mode<synchronous>, transform_indices = @transform_2, window_bounds = array<i64: 2, 16>}, {transform_indices = @transform_3, window_bounds = array<i64: 1, 32, 96>}, {transform_indices = @transform_4, window_bounds = array<i64: 1, 1, 96>}, {transform_indices = @transform_5, window_bounds = array<i64: 1, 4, 8, 32>}, {transform_indices = @transform_6, window_bounds = array<i64: 1, 6, 32>}, {transform_indices = @transform_7, window_bounds = array<i64: 1, 32, 2048>}, {transform_indices = @transform_8, window_bounds = array<i64: 1, 1, 2048>}, {transform_indices = @transform_9, window_bounds = array<i64: 1, 2048, 32>}, {pipeline_mode = #tpu.pipeline_mode<synchronous>, transform_indices = @transform_10, window_bounds = array<i64: 2, 32>}]} {
    %c0_i32 = arith.constant 0 : i32
    %0 = arith.cmpi eq, %arg0, %c0_i32 : i32
    %1 = arith.extui %0 : i1 to i32
    %c0_i32_0 = arith.constant 0 : i32
    %2 = arith.cmpi ne, %1, %c0_i32_0 : i32
    scf.if %2 {
      %c0_73 = arith.constant 0 : index
      %c0_74 = arith.constant 0 : index
      %191 = vector.load %arg1[%c0_73, %c0_74] : memref<16x32xf32, #tpu.memory_space<vmem>>, vector<16x32xf32>
      %c0_75 = arith.constant 0 : index
      %c0_76 = arith.constant 0 : index
      %192 = vector.load %arg12[%c0_75, %c0_76] : memref<16x32xf32, #tpu.memory_space<vmem>>, vector<16x32xf32>
      tpu.vector_store %arg12[%c0_75, %c0_76], %191 {strides = array<i32>} : memref<16x32xf32, #tpu.memory_space<vmem>>, vector<16x32xf32>,
    } else {
    }
    %c0 = arith.constant 0 : index
    %c0_1 = arith.constant 0 : index
    %3 = vector.load %arg12[%c0, %c0_1] : memref<16x32xf32, #tpu.memory_space<vmem>>, vector<16x32xf32>
    %c0_2 = arith.constant 0 : index
    %c0_3 = arith.constant 0 : index
    %4 = vector.load %arg2[%c0_2, %c0_3] : memref<16x16xf32, #tpu.memory_space<vmem>>, vector<16x16xf32>
    %c0_4 = arith.constant 0 : index
    %c0_5 = arith.constant 0 : index
    %c0_6 = arith.constant 0 : index
    %5 = vector.load %arg7[%c0_4, %c0_5, %c0_6] : memref<1x6x32xf32, #tpu.memory_space<vmem>>, vector<1x6x32xf32>
    %6 = vector.shape_cast %5 : vector<1x6x32xf32> to vector<6x32xf32>
    %7 = vector.extract_strided_slice %6 {offsets = [0, 0], sizes = [1, 32], strides = [1, 1]} : vector<6x32xf32> to vector<1x32xf32>
    %8 = vector.extract_strided_slice %6 {offsets = [1, 0], sizes = [1, 32], strides = [1, 1]} : vector<6x32xf32> to vector<1x32xf32>
    %9 = vector.extract_strided_slice %6 {offsets = [2, 0], sizes = [1, 32], strides = [1, 1]} : vector<6x32xf32> to vector<1x32xf32>
    %10 = vector.extract_strided_slice %6 {offsets = [3, 0], sizes = [1, 32], strides = [1, 1]} : vector<6x32xf32> to vector<1x32xf32>
    %11 = vector.extract_strided_slice %6 {offsets = [4, 0], sizes = [1, 32], strides = [1, 1]} : vector<6x32xf32> to vector<1x32xf32>
    %12 = vector.extract_strided_slice %6 {offsets = [5, 0], sizes = [1, 32], strides = [1, 1]} : vector<6x32xf32> to vector<1x32xf32>
    %13 = arith.truncf %3 : vector<16x32xf32> to vector<16x32xbf16>
    %c0_7 = arith.constant 0 : index
    %c0_8 = arith.constant 0 : index
    %c0_9 = arith.constant 0 : index
    %14 = vector.load %arg4[%c0_7, %c0_8, %c0_9] : memref<1x32x96xbf16, #tpu.memory_space<vmem>>, vector<1x32x96xbf16>
    %15 = vector.shape_cast %14 : vector<1x32x96xbf16> to vector<32x96xbf16>
    %cst = arith.constant dense<0.000000e+00> : vector<16x96xf32>
    %16 = tpu.matmul %13, %15, %cst {dimension_numbers = #tpu.dot_dimension_numbers<[1], [0], [0], [1], [0, 0, 1, 1], [], []>} : vector<16x32xbf16>, vector<32x96xbf16>, vector<16x96xf32> -> vector<16x96xf32>
    %c0_10 = arith.constant 0 : index
    %c0_11 = arith.constant 0 : index
    %c0_12 = arith.constant 0 : index
    %17 = vector.load %arg5[%c0_10, %c0_11, %c0_12] : memref<1x1x96xf32, #tpu.memory_space<vmem>>, vector<1x1x96xf32>
    %18 = vector.shape_cast %17 : vector<1x1x96xf32> to vector<1x96xf32>
    %19 = vector.broadcast %18 : vector<1x96xf32> to vector<16x96xf32>
    %20 = arith.addf %16, %19 : vector<16x96xf32>
    %21 = vector.extract_strided_slice %20 {offsets = [0, 0], sizes = [16, 32], strides = [1, 1]} : vector<16x96xf32> to vector<16x32xf32>
    %cst_13 = arith.constant 0.353553385 : f32
    %22 = vector.broadcast %cst_13 : f32 to vector<16x32xf32>
    %23 = arith.mulf %21, %22 : vector<16x32xf32>
    %24 = vector.extract_strided_slice %20 {offsets = [0, 32], sizes = [16, 32], strides = [1, 1]} : vector<16x96xf32> to vector<16x32xf32>
    %25 = vector.extract_strided_slice %20 {offsets = [0, 64], sizes = [16, 32], strides = [1, 1]} : vector<16x96xf32> to vector<16x32xf32>
    %cst_14 = arith.constant 0.000000e+00 : f32
    %26 = vector.broadcast %cst_14 : f32 to vector<16x32xf32>
    %27 = vector.extract_strided_slice %23 {offsets = [0, 0], sizes = [16, 8], strides = [1, 1]} : vector<16x32xf32> to vector<16x8xf32>
    %28 = arith.truncf %27 : vector<16x8xf32> to vector<16x8xbf16>
    %29 = vector.extract_strided_slice %24 {offsets = [0, 0], sizes = [16, 8], strides = [1, 1]} : vector<16x32xf32> to vector<16x8xf32>
    %30 = arith.truncf %29 : vector<16x8xf32> to vector<16x8xbf16>
    %31 = vector.extract_strided_slice %25 {offsets = [0, 0], sizes = [16, 8], strides = [1, 1]} : vector<16x32xf32> to vector<16x8xf32>
    %32 = arith.truncf %31 : vector<16x8xf32> to vector<16x8xbf16>
    %cst_15 = arith.constant dense<0.000000e+00> : vector<16x16xf32>
    %33 = tpu.matmul %28, %30, %cst_15 {dimension_numbers = #tpu.dot_dimension_numbers<[1], [1], [0], [0], [0, 0, 1, 0], [], []>} : vector<16x8xbf16>, vector<16x8xbf16>, vector<16x16xf32> -> vector<16x16xf32>
    %34 = arith.addf %33, %4 : vector<16x16xf32>
    %cst_16 = arith.constant dense<0xFF800000> : vector<16xf32>
    %35 = vector.multi_reduction <maximumf>, %34, %cst_16 [1] : vector<16x16xf32> to vector<16xf32>
    %36 = vector.shape_cast %35 : vector<16xf32> to vector<16x1xf32>
    %37 = vector.broadcast %36 : vector<16x1xf32> to vector<16x16xf32>
    %38 = arith.subf %34, %37 : vector<16x16xf32>
    %39 = math.exp %38 : vector<16x16xf32>
    %cst_17 = arith.constant dense<0.000000e+00> : vector<16xf32>
    %40 = vector.multi_reduction <add>, %39, %cst_17 [1] : vector<16x16xf32> to vector<16xf32>
    %41 = vector.shape_cast %40 : vector<16xf32> to vector<16x1xf32>
    %42 = tpu.reciprocal %41 {approx = true} : vector<16x1xf32> -> vector<16x1xf32>
    %43 = vector.broadcast %42 : vector<16x1xf32> to vector<16x16xf32>
    %44 = arith.mulf %39, %43 : vector<16x16xf32>
    %45 = arith.truncf %44 : vector<16x16xf32> to vector<16x16xbf16>
    %cst_18 = arith.constant dense<0.000000e+00> : vector<16x8xf32>
    %46 = tpu.matmul %45, %32, %cst_18 {dimension_numbers = #tpu.dot_dimension_numbers<[1], [0], [0], [1], [0, 0, 1, 1], [], []>} : vector<16x16xbf16>, vector<16x8xbf16>, vector<16x8xf32> -> vector<16x8xf32>
    %47 = arith.truncf %46 : vector<16x8xf32> to vector<16x8xbf16>
    %c0_19 = arith.constant 0 : index
    %c0_20 = arith.constant 0 : index
    %c0_21 = arith.constant 0 : index
    %c0_22 = arith.constant 0 : index
    %48 = vector.load %arg6[%c0_19, %c0_20, %c0_21, %c0_22] : memref<1x4x8x32xbf16, #tpu.memory_space<vmem>>, vector<1x1x8x32xbf16>
    %49 = vector.shape_cast %48 : vector<1x1x8x32xbf16> to vector<8x32xbf16>
    %cst_23 = arith.constant dense<0.000000e+00> : vector<16x32xf32>
    %50 = tpu.matmul %47, %49, %cst_23 {dimension_numbers = #tpu.dot_dimension_numbers<[1], [0], [0], [1], [0, 0, 1, 1], [], []>} : vector<16x8xbf16>, vector<8x32xbf16>, vector<16x32xf32> -> vector<16x32xf32>
    %51 = arith.addf %26, %50 : vector<16x32xf32>
    %52 = vector.extract_strided_slice %23 {offsets = [0, 8], sizes = [16, 8], strides = [1, 1]} : vector<16x32xf32> to vector<16x8xf32>
    %53 = arith.truncf %52 : vector<16x8xf32> to vector<16x8xbf16>
    %54 = vector.extract_strided_slice %24 {offsets = [0, 8], sizes = [16, 8], strides = [1, 1]} : vector<16x32xf32> to vector<16x8xf32>
    %55 = arith.truncf %54 : vector<16x8xf32> to vector<16x8xbf16>
    %56 = vector.extract_strided_slice %25 {offsets = [0, 8], sizes = [16, 8], strides = [1, 1]} : vector<16x32xf32> to vector<16x8xf32>
    %57 = arith.truncf %56 : vector<16x8xf32> to vector<16x8xbf16>
    %cst_24 = arith.constant dense<0.000000e+00> : vector<16x16xf32>
    %58 = tpu.matmul %53, %55, %cst_24 {dimension_numbers = #tpu.dot_dimension_numbers<[1], [1], [0], [0], [0, 0, 1, 0], [], []>} : vector<16x8xbf16>, vector<16x8xbf16>, vector<16x16xf32> -> vector<16x16xf32>
    %59 = arith.addf %58, %4 : vector<16x16xf32>
    %cst_25 = arith.constant dense<0xFF800000> : vector<16xf32>
    %60 = vector.multi_reduction <maximumf>, %59, %cst_25 [1] : vector<16x16xf32> to vector<16xf32>
    %61 = vector.shape_cast %60 : vector<16xf32> to vector<16x1xf32>
    %62 = vector.broadcast %61 : vector<16x1xf32> to vector<16x16xf32>
    %63 = arith.subf %59, %62 : vector<16x16xf32>
    %64 = math.exp %63 : vector<16x16xf32>
    %cst_26 = arith.constant dense<0.000000e+00> : vector<16xf32>
    %65 = vector.multi_reduction <add>, %64, %cst_26 [1] : vector<16x16xf32> to vector<16xf32>
    %66 = vector.shape_cast %65 : vector<16xf32> to vector<16x1xf32>
    %67 = tpu.reciprocal %66 {approx = true} : vector<16x1xf32> -> vector<16x1xf32>
    %68 = vector.broadcast %67 : vector<16x1xf32> to vector<16x16xf32>
    %69 = arith.mulf %64, %68 : vector<16x16xf32>
    %70 = arith.truncf %69 : vector<16x16xf32> to vector<16x16xbf16>
    %cst_27 = arith.constant dense<0.000000e+00> : vector<16x8xf32>
    %71 = tpu.matmul %70, %57, %cst_27 {dimension_numbers = #tpu.dot_dimension_numbers<[1], [0], [0], [1], [0, 0, 1, 1], [], []>} : vector<16x16xbf16>, vector<16x8xbf16>, vector<16x8xf32> -> vector<16x8xf32>
    %72 = arith.truncf %71 : vector<16x8xf32> to vector<16x8xbf16>
    %c0_28 = arith.constant 0 : index
    %c1 = arith.constant 1 : index
    %c0_29 = arith.constant 0 : index
    %c0_30 = arith.constant 0 : index
    %73 = vector.load %arg6[%c0_28, %c1, %c0_29, %c0_30] : memref<1x4x8x32xbf16, #tpu.memory_space<vmem>>, vector<1x1x8x32xbf16>
    %74 = vector.shape_cast %73 : vector<1x1x8x32xbf16> to vector<8x32xbf16>
    %cst_31 = arith.constant dense<0.000000e+00> : vector<16x32xf32>
    %75 = tpu.matmul %72, %74, %cst_31 {dimension_numbers = #tpu.dot_dimension_numbers<[1], [0], [0], [1], [0, 0, 1, 1], [], []>} : vector<16x8xbf16>, vector<8x32xbf16>, vector<16x32xf32> -> vector<16x32xf32>
    %76 = arith.addf %51, %75 : vector<16x32xf32>
    %77 = vector.extract_strided_slice %23 {offsets = [0, 16], sizes = [16, 8], strides = [1, 1]} : vector<16x32xf32> to vector<16x8xf32>
    %78 = arith.truncf %77 : vector<16x8xf32> to vector<16x8xbf16>
    %79 = vector.extract_strided_slice %24 {offsets = [0, 16], sizes = [16, 8], strides = [1, 1]} : vector<16x32xf32> to vector<16x8xf32>
    %80 = arith.truncf %79 : vector<16x8xf32> to vector<16x8xbf16>
    %81 = vector.extract_strided_slice %25 {offsets = [0, 16], sizes = [16, 8], strides = [1, 1]} : vector<16x32xf32> to vector<16x8xf32>
    %82 = arith.truncf %81 : vector<16x8xf32> to vector<16x8xbf16>
    %cst_32 = arith.constant dense<0.000000e+00> : vector<16x16xf32>
    %83 = tpu.matmul %78, %80, %cst_32 {dimension_numbers = #tpu.dot_dimension_numbers<[1], [1], [0], [0], [0, 0, 1, 0], [], []>} : vector<16x8xbf16>, vector<16x8xbf16>, vector<16x16xf32> -> vector<16x16xf32>
    %84 = arith.addf %83, %4 : vector<16x16xf32>
    %cst_33 = arith.constant dense<0xFF800000> : vector<16xf32>
    %85 = vector.multi_reduction <maximumf>, %84, %cst_33 [1] : vector<16x16xf32> to vector<16xf32>
    %86 = vector.shape_cast %85 : vector<16xf32> to vector<16x1xf32>
    %87 = vector.broadcast %86 : vector<16x1xf32> to vector<16x16xf32>
    %88 = arith.subf %84, %87 : vector<16x16xf32>
    %89 = math.exp %88 : vector<16x16xf32>
    %cst_34 = arith.constant dense<0.000000e+00> : vector<16xf32>
    %90 = vector.multi_reduction <add>, %89, %cst_34 [1] : vector<16x16xf32> to vector<16xf32>
    %91 = vector.shape_cast %90 : vector<16xf32> to vector<16x1xf32>
    %92 = tpu.reciprocal %91 {approx = true} : vector<16x1xf32> -> vector<16x1xf32>
    %93 = vector.broadcast %92 : vector<16x1xf32> to vector<16x16xf32>
    %94 = arith.mulf %89, %93 : vector<16x16xf32>
    %95 = arith.truncf %94 : vector<16x16xf32> to vector<16x16xbf16>
    %cst_35 = arith.constant dense<0.000000e+00> : vector<16x8xf32>
    %96 = tpu.matmul %95, %82, %cst_35 {dimension_numbers = #tpu.dot_dimension_numbers<[1], [0], [0], [1], [0, 0, 1, 1], [], []>} : vector<16x16xbf16>, vector<16x8xbf16>, vector<16x8xf32> -> vector<16x8xf32>
    %97 = arith.truncf %96 : vector<16x8xf32> to vector<16x8xbf16>
    %c0_36 = arith.constant 0 : index
    %c2 = arith.constant 2 : index
    %c0_37 = arith.constant 0 : index
    %c0_38 = arith.constant 0 : index
    %98 = vector.load %arg6[%c0_36, %c2, %c0_37, %c0_38] : memref<1x4x8x32xbf16, #tpu.memory_space<vmem>>, vector<1x1x8x32xbf16>
    %99 = vector.shape_cast %98 : vector<1x1x8x32xbf16> to vector<8x32xbf16>
    %cst_39 = arith.constant dense<0.000000e+00> : vector<16x32xf32>
    %100 = tpu.matmul %97, %99, %cst_39 {dimension_numbers = #tpu.dot_dimension_numbers<[1], [0], [0], [1], [0, 0, 1, 1], [], []>} : vector<16x8xbf16>, vector<8x32xbf16>, vector<16x32xf32> -> vector<16x32xf32>
    %101 = arith.addf %76, %100 : vector<16x32xf32>
    %102 = vector.extract_strided_slice %23 {offsets = [0, 24], sizes = [16, 8], strides = [1, 1]} : vector<16x32xf32> to vector<16x8xf32>
    %103 = arith.truncf %102 : vector<16x8xf32> to vector<16x8xbf16>
    %104 = vector.extract_strided_slice %24 {offsets = [0, 24], sizes = [16, 8], strides = [1, 1]} : vector<16x32xf32> to vector<16x8xf32>
    %105 = arith.truncf %104 : vector<16x8xf32> to vector<16x8xbf16>
    %106 = vector.extract_strided_slice %25 {offsets = [0, 24], sizes = [16, 8], strides = [1, 1]} : vector<16x32xf32> to vector<16x8xf32>
    %107 = arith.truncf %106 : vector<16x8xf32> to vector<16x8xbf16>
    %cst_40 = arith.constant dense<0.000000e+00> : vector<16x16xf32>
    %108 = tpu.matmul %103, %105, %cst_40 {dimension_numbers = #tpu.dot_dimension_numbers<[1], [1], [0], [0], [0, 0, 1, 0], [], []>} : vector<16x8xbf16>, vector<16x8xbf16>, vector<16x16xf32> -> vector<16x16xf32>
    %109 = arith.addf %108, %4 : vector<16x16xf32>
    %cst_41 = arith.constant dense<0xFF800000> : vector<16xf32>
    %110 = vector.multi_reduction <maximumf>, %109, %cst_41 [1] : vector<16x16xf32> to vector<16xf32>
    %111 = vector.shape_cast %110 : vector<16xf32> to vector<16x1xf32>
    %112 = vector.broadcast %111 : vector<16x1xf32> to vector<16x16xf32>
    %113 = arith.subf %109, %112 : vector<16x16xf32>
    %114 = math.exp %113 : vector<16x16xf32>
    %cst_42 = arith.constant dense<0.000000e+00> : vector<16xf32>
    %115 = vector.multi_reduction <add>, %114, %cst_42 [1] : vector<16x16xf32> to vector<16xf32>
    %116 = vector.shape_cast %115 : vector<16xf32> to vector<16x1xf32>
    %117 = tpu.reciprocal %116 {approx = true} : vector<16x1xf32> -> vector<16x1xf32>
    %118 = vector.broadcast %117 : vector<16x1xf32> to vector<16x16xf32>
    %119 = arith.mulf %114, %118 : vector<16x16xf32>
    %120 = arith.truncf %119 : vector<16x16xf32> to vector<16x16xbf16>
    %cst_43 = arith.constant dense<0.000000e+00> : vector<16x8xf32>
    %121 = tpu.matmul %120, %107, %cst_43 {dimension_numbers = #tpu.dot_dimension_numbers<[1], [0], [0], [1], [0, 0, 1, 1], [], []>} : vector<16x16xbf16>, vector<16x8xbf16>, vector<16x8xf32> -> vector<16x8xf32>
    %122 = arith.truncf %121 : vector<16x8xf32> to vector<16x8xbf16>
    %c0_44 = arith.constant 0 : index
    %c3 = arith.constant 3 : index
    %c0_45 = arith.constant 0 : index
    %c0_46 = arith.constant 0 : index
    %123 = vector.load %arg6[%c0_44, %c3, %c0_45, %c0_46] : memref<1x4x8x32xbf16, #tpu.memory_space<vmem>>, vector<1x1x8x32xbf16>
    %124 = vector.shape_cast %123 : vector<1x1x8x32xbf16> to vector<8x32xbf16>
    %cst_47 = arith.constant dense<0.000000e+00> : vector<16x32xf32>
    %125 = tpu.matmul %122, %124, %cst_47 {dimension_numbers = #tpu.dot_dimension_numbers<[1], [0], [0], [1], [0, 0, 1, 1], [], []>} : vector<16x8xbf16>, vector<8x32xbf16>, vector<16x32xf32> -> vector<16x32xf32>
    %126 = arith.addf %101, %125 : vector<16x32xf32>
    %127 = vector.broadcast %7 : vector<1x32xf32> to vector<16x32xf32>
    %128 = arith.addf %126, %127 : vector<16x32xf32>
    %129 = arith.addf %3, %128 : vector<16x32xf32>
    %cst_48 = arith.constant dense<0.000000e+00> : vector<16xf32>
    %130 = vector.multi_reduction <add>, %129, %cst_48 [1] : vector<16x32xf32> to vector<16xf32>
    %131 = vector.shape_cast %130 : vector<16xf32> to vector<16x1xf32>
    %cst_49 = arith.constant 3.200000e+01 : f32
    %132 = vector.broadcast %cst_49 : f32 to vector<16x1xf32>
    %133 = arith.divf %131, %132 : vector<16x1xf32>
    %134 = vector.broadcast %133 : vector<16x1xf32> to vector<16x32xf32>
    %135 = arith.subf %129, %134 : vector<16x32xf32>
    %136 = arith.mulf %135, %135 : vector<16x32xf32>
    %cst_50 = arith.constant dense<0.000000e+00> : vector<16xf32>
    %137 = vector.multi_reduction <add>, %136, %cst_50 [1] : vector<16x32xf32> to vector<16xf32>
    %138 = vector.shape_cast %137 : vector<16xf32> to vector<16x1xf32>
    %cst_51 = arith.constant 3.200000e+01 : f32
    %139 = vector.broadcast %cst_51 : f32 to vector<16x1xf32>
    %140 = arith.divf %138, %139 : vector<16x1xf32>
    %cst_52 = arith.constant 9.99999974E-6 : f32
    %141 = vector.broadcast %cst_52 : f32 to vector<16x1xf32>
    %142 = arith.addf %140, %141 : vector<16x1xf32>
    %143 = math.rsqrt %142 : vector<16x1xf32>
    %144 = vector.broadcast %143 : vector<16x1xf32> to vector<16x32xf32>
    %145 = arith.mulf %135, %144 : vector<16x32xf32>
    %146 = vector.broadcast %9 : vector<1x32xf32> to vector<16x32xf32>
    %147 = arith.mulf %145, %146 : vector<16x32xf32>
    %148 = vector.broadcast %10 : vector<1x32xf32> to vector<16x32xf32>
    %149 = arith.addf %147, %148 : vector<16x32xf32>
    %150 = arith.truncf %149 : vector<16x32xf32> to vector<16x32xbf16>
    %c0_53 = arith.constant 0 : index
    %c0_54 = arith.constant 0 : index
    %c0_55 = arith.constant 0 : index
    %151 = vector.load %arg8[%c0_53, %c0_54, %c0_55] : memref<1x32x2048xbf16, #tpu.memory_space<vmem>>, vector<1x32x2048xbf16>
    %152 = vector.shape_cast %151 : vector<1x32x2048xbf16> to vector<32x2048xbf16>
    %cst_56 = arith.constant dense<0.000000e+00> : vector<16x2048xf32>
    %153 = tpu.matmul %150, %152, %cst_56 {dimension_numbers = #tpu.dot_dimension_numbers<[1], [0], [0], [1], [0, 0, 1, 1], [], []>} : vector<16x32xbf16>, vector<32x2048xbf16>, vector<16x2048xf32> -> vector<16x2048xf32>
    %c0_57 = arith.constant 0 : index
    %c0_58 = arith.constant 0 : index
    %c0_59 = arith.constant 0 : index
    %154 = vector.load %arg9[%c0_57, %c0_58, %c0_59] : memref<1x1x2048xf32, #tpu.memory_space<vmem>>, vector<1x1x2048xf32>
    %155 = vector.shape_cast %154 : vector<1x1x2048xf32> to vector<1x2048xf32>
    %156 = vector.broadcast %155 : vector<1x2048xf32> to vector<16x2048xf32>
    %157 = arith.addf %153, %156 : vector<16x2048xf32>
    %cst_60 = arith.constant 0.000000e+00 : f32
    %158 = vector.broadcast %cst_60 : f32 to vector<16x2048xf32>
    %159 = arith.maximumf %157, %158 : vector<16x2048xf32>
    %160 = arith.truncf %159 : vector<16x2048xf32> to vector<16x2048xbf16>
    %c0_61 = arith.constant 0 : index
    %c0_62 = arith.constant 0 : index
    %c0_63 = arith.constant 0 : index
    %161 = vector.load %arg10[%c0_61, %c0_62, %c0_63] : memref<1x2048x32xbf16, #tpu.memory_space<vmem>>, vector<1x2048x32xbf16>
    %162 = vector.shape_cast %161 : vector<1x2048x32xbf16> to vector<2048x32xbf16>
    %cst_64 = arith.constant dense<0.000000e+00> : vector<16x32xf32>
    %163 = tpu.matmul %160, %162, %cst_64 {dimension_numbers = #tpu.dot_dimension_numbers<[1], [0], [0], [1], [0, 0, 1, 1], [], []>} : vector<16x2048xbf16>, vector<2048x32xbf16>, vector<16x32xf32> -> vector<16x32xf32>
    %164 = vector.broadcast %8 : vector<1x32xf32> to vector<16x32xf32>
    %165 = arith.addf %163, %164 : vector<16x32xf32>
    %166 = arith.addf %149, %165 : vector<16x32xf32>
    %cst_65 = arith.constant dense<0.000000e+00> : vector<16xf32>
    %167 = vector.multi_reduction <add>, %166, %cst_65 [1] : vector<16x32xf32> to vector<16xf32>
    %168 = vector.shape_cast %167 : vector<16xf32> to vector<16x1xf32>
    %cst_66 = arith.constant 3.200000e+01 : f32
    %169 = vector.broadcast %cst_66 : f32 to vector<16x1xf32>
    %170 = arith.divf %168, %169 : vector<16x1xf32>
    %171 = vector.broadcast %170 : vector<16x1xf32> to vector<16x32xf32>
    %172 = arith.subf %166, %171 : vector<16x32xf32>
    %173 = arith.mulf %172, %172 : vector<16x32xf32>
    %cst_67 = arith.constant dense<0.000000e+00> : vector<16xf32>
    %174 = vector.multi_reduction <add>, %173, %cst_67 [1] : vector<16x32xf32> to vector<16xf32>
    %175 = vector.shape_cast %174 : vector<16xf32> to vector<16x1xf32>
    %cst_68 = arith.constant 3.200000e+01 : f32
    %176 = vector.broadcast %cst_68 : f32 to vector<16x1xf32>
    %177 = arith.divf %175, %176 : vector<16x1xf32>
    %cst_69 = arith.constant 9.99999974E-6 : f32
    %178 = vector.broadcast %cst_69 : f32 to vector<16x1xf32>
    %179 = arith.addf %177, %178 : vector<16x1xf32>
    %180 = math.rsqrt %179 : vector<16x1xf32>
    %181 = vector.broadcast %180 : vector<16x1xf32> to vector<16x32xf32>
    %182 = arith.mulf %172, %181 : vector<16x32xf32>
    %183 = vector.broadcast %11 : vector<1x32xf32> to vector<16x32xf32>
    %184 = arith.mulf %182, %183 : vector<16x32xf32>
    %185 = vector.broadcast %12 : vector<1x32xf32> to vector<16x32xf32>
    %186 = arith.addf %184, %185 : vector<16x32xf32>
    %c0_70 = arith.constant 0 : index
    %c0_71 = arith.constant 0 : index
    %187 = vector.load %arg12[%c0_70, %c0_71] : memref<16x32xf32, #tpu.memory_space<vmem>>, vector<16x32xf32>
    tpu.vector_store %arg12[%c0_70, %c0_71], %186 {strides = array<i32>} : memref<16x32xf32, #tpu.memory_space<vmem>>, vector<16x32xf32>,
    %c1_i32 = arith.constant 1 : i32
    %188 = arith.cmpi eq, %arg0, %c1_i32 : i32
    %189 = arith.extui %188 : i1 to i32
    %c0_i32_72 = arith.constant 0 : i32
    %190 = arith.cmpi ne, %189, %c0_i32_72 : i32
    scf.if %190 {
      %c0_73 = arith.constant 0 : index
      %c0_74 = arith.constant 0 : index
      %191 = vector.load %arg3[%c0_73, %c0_74] : memref<2x16xf32, #tpu.memory_space<vmem>>, vector<2x16xf32>
      %cst_75 = arith.constant dense<0.000000e+00> : vector<2x32xf32>
      %192 = tpu.matmul %191, %186, %cst_75 {dimension_numbers = #tpu.dot_dimension_numbers<[1], [0], [0], [1], [0, 0, 1, 1], [], []>} : vector<2x16xf32>, vector<16x32xf32>, vector<2x32xf32> -> vector<2x32xf32>
      %c0_76 = arith.constant 0 : index
      %c0_77 = arith.constant 0 : index
      %193 = vector.load %arg11[%c0_76, %c0_77] : memref<2x32xf32, #tpu.memory_space<vmem>>, vector<2x32xf32>
      tpu.vector_store %arg11[%c0_76, %c0_77], %192 {strides = array<i32>} : memref<2x32xf32, #tpu.memory_space<vmem>>, vector<2x32xf32>,
    } else {
    }
    return
  }
  func.func @transform_0(%arg0: i32) -> (i32, i32) {
    %c0_i32 = arith.constant 0 : i32
    %c0_i32_0 = arith.constant 0 : i32
    %c0_i32_1 = arith.constant 0 : i32
    return %c0_i32, %c0_i32_0 : i32, i32
  }
  func.func @transform_1(%arg0: i32) -> (i32, i32) {
    %c0_i32 = arith.constant 0 : i32
    %c0_i32_0 = arith.constant 0 : i32
    %c0_i32_1 = arith.constant 0 : i32
    return %c0_i32, %c0_i32_0 : i32, i32
  }
  func.func @transform_2(%arg0: i32) -> (i32, i32) {
    %c0_i32 = arith.constant 0 : i32
    %c0_i32_0 = arith.constant 0 : i32
    %c0_i32_1 = arith.constant 0 : i32
    return %c0_i32, %c0_i32_0 : i32, i32
  }
  func.func @transform_3(%arg0: i32) -> (i32, i32, i32) {
    %c0_i32 = arith.constant 0 : i32
    %c0_i32_0 = arith.constant 0 : i32
    %c0_i32_1 = arith.constant 0 : i32
    return %arg0, %c0_i32, %c0_i32_0 : i32, i32, i32
  }
  func.func @transform_4(%arg0: i32) -> (i32, i32, i32) {
    %c0_i32 = arith.constant 0 : i32
    %c0_i32_0 = arith.constant 0 : i32
    %c0_i32_1 = arith.constant 0 : i32
    return %arg0, %c0_i32, %c0_i32_0 : i32, i32, i32
  }
  func.func @transform_5(%arg0: i32) -> (i32, i32, i32, i32) {
    %c0_i32 = arith.constant 0 : i32
    %c0_i32_0 = arith.constant 0 : i32
    %c0_i32_1 = arith.constant 0 : i32
    %c0_i32_2 = arith.constant 0 : i32
    return %arg0, %c0_i32, %c0_i32_0, %c0_i32_1 : i32, i32, i32, i32
  }
  func.func @transform_6(%arg0: i32) -> (i32, i32, i32) {
    %c0_i32 = arith.constant 0 : i32
    %c0_i32_0 = arith.constant 0 : i32
    %c0_i32_1 = arith.constant 0 : i32
    return %arg0, %c0_i32, %c0_i32_0 : i32, i32, i32
  }
  func.func @transform_7(%arg0: i32) -> (i32, i32, i32) {
    %c0_i32 = arith.constant 0 : i32
    %c0_i32_0 = arith.constant 0 : i32
    %c0_i32_1 = arith.constant 0 : i32
    return %arg0, %c0_i32, %c0_i32_0 : i32, i32, i32
  }
  func.func @transform_8(%arg0: i32) -> (i32, i32, i32) {
    %c0_i32 = arith.constant 0 : i32
    %c0_i32_0 = arith.constant 0 : i32
    %c0_i32_1 = arith.constant 0 : i32
    return %arg0, %c0_i32, %c0_i32_0 : i32, i32, i32
  }
  func.func @transform_9(%arg0: i32) -> (i32, i32, i32) {
    %c0_i32 = arith.constant 0 : i32
    %c0_i32_0 = arith.constant 0 : i32
    %c0_i32_1 = arith.constant 0 : i32
    return %arg0, %c0_i32, %c0_i32_0 : i32, i32, i32
  }
  func.func @transform_10(%arg0: i32) -> (i32, i32) {
    %c0_i32 = arith.constant 0 : i32
    %c0_i32_0 = arith.constant 0 : i32
    %c0_i32_1 = arith.constant 0 : i32
    return %c0_i32, %c0_i32_0 : i32, i32
  }
}

</mosaic_0001>

<bundles_post_ra>
// kernel: tpu_custom_call.1
= control target key start
LH: loop header
LB: loop body
LE: loop exit
PB: predicated region body
PF: predicated region fallthrough
CT: control target
= control target key end

     0   :  { %s4390_s0 = inlined_call_operand.vmem [shape: f32[16,32], index: 0, kind: input, shape index: {}]   ;;  %s4391_s1 = inlined_call_operand.vmem [shape: f32[16,16], index: 1, kind: input, shape index: {}]   ;;  %s4392_s2 = inlined_call_operand.vmem [shape: f32[2,16], index: 2, kind: input, shape index: {}]   ;;  %s4393_s3 = inlined_call_operand.vmem [shape: bf16[2,32,96], index: 3, kind: input, shape index: {}]   ;;  %s4394_s4 = inlined_call_operand.vmem [shape: f32[2,1,96], index: 4, kind: input, shape index: {}]   ;;  %s4395_s5 = inlined_call_operand.vmem [shape: bf16[2,4,8,32], index: 5, kind: input, shape index: {}]   ;;  %s4396_s6 = inlined_call_operand.vmem [shape: f32[2,6,32], index: 6, kind: input, shape index: {}]   ;;  %s4397_s7 = inlined_call_operand.vmem [shape: bf16[2,32,2048], index: 7, kind: input, shape index: {}]   ;;  %s4398_s8 = inlined_call_operand.vmem [shape: f32[2,1,2048], index: 8, kind: input, shape index: {}]   ;;  %s4399_s9 = inlined_call_operand.vmem [shape: bf16[2,2048,32], index: 9, kind: input, shape index: {}]   ;;  %s4400_s10 = inlined_call_operand.hbm [shape: f32[2,32], index: 10, kind: output, shape index: {}]  }
   0x1   :  { %4401 = sst [smem:[#allocation6_spill]] %s4393_s3 }
   0x2   :  { %4402 = sst [smem:[#allocation7_spill]] %s4394_s4 }
   0x3   :  { %15 = vsyncpa [#allocation4], 0  ;;  %s3940_s13 = smov 0  }
   0x4 LB: > { %s3946_s14 = sadd.s32 4294967295, %s3870_s13   ;;  %p2897_p0 = scmp.ge.s32.totalorder %s3870_s13, 1  ;;  %s3870_s13 = sphi %s3940_s13, %s21_s13  }
   0x5   : > { %p364_p1 = scmp.lt.s32.totalorder %s3870_s13, 3 }
   0x7   : > { %p365_p2 = pnand %p2897_p0, %p364_p1 }
   0x8   : > { %p423_p3 = scmp.lt.s32.totalorder (!%p365_p2), %s3946_s14, 1  ;;  %s4403_s4 = sld [smem:[#allocation7_spill]] (!%p365_p2) }
   0x9   : > { %368 = sbr.rel (%p365_p2) target bundleno = 2572 (0xa0c), region = 60  ;;  %s4404_s3 = sld [smem:[#allocation6_spill]] (!%p365_p2) }
   0xa   : > { %p2908_p4 = scmp.ne.s32.totalorder (!%p365_p2), %s3946_s14, 0 }
   0xe   : > { %s3952_s15 = scalar_select %p423_p3, %s3946_s14, 1 }
  0x10   : > { %s3595_s16 = sshll.u32 %s3952_s15, 4  ;;  %s430_s19 = scalar_lea.vmem %s4403_s4, %s3952_s15 }
  0x11   : > { %s427_s22 = scalar_lea.vmem %s4404_s3, %s3595_s16  ;;  %s3965_s25 = scalar_lea.vmem %s4395_s5, %s3595_s16 }
  0x12   : > { %s2902_s26 = sshll.u32 %s3952_s15, 3  ;;  %s3597_s27 = sshll.u32 %s3952_s15, 8 }
  0x13   : > { %s3972_s30 = scalar_lea.vmem %s4396_s6, %s2902_s26  ;;  %s3977_s17 = scalar_lea.vmem %s4397_s7, %s3597_s27 }
  0x14   : > { %s3982_s21 = scalar_lea.vmem %s4398_s8, %s3595_s16  ;;  %s3598_s23 = sshll.u32 %s3952_s15, 10 }
  0x15   : > { %s3988_s4 = scalar_lea.vmem %s4399_s9, %s3598_s23  ;;  %458 = sbr.rel (%p2908_p4) target bundleno = 29 (0x1d), region = 64 }
  0x1a   : > { %v459_v0 = vld [vmem:[%s4390_s0] sm:$0xff]  ;;  %vm461_vm0 = vcmask 261120   ;;  %v460_v1 = vld [vmem:[%s4390_s0 + $0x8] sm:$0xff] }
  0x1b   : > { %462 = vst.msk [vmem:[#allocation2] sm:$0xff] %vm461_vm0, %v459_v0 }
  0x1c   : > { %463 = vst.msk [vmem:[#allocation2 + $0x8] sm:$0xff] %vm461_vm0, %v460_v1 }
  0x1d PF: > { %v3600_v2 = vld [vmem:[%s427_s22 + $0x8] sm:$0xff]  ;;  %v3599_v3 = vld [vmem:[%s427_s22] sm:$0xff]  ;;  %vm490_vm1 = vcmask 261120   ;;  %s3872_s3 = smov 96   ;;  %vm515_vm2 = vcmask 64512   ;;  %vm536_vm3 = vcmask 130048  }
  0x1e   : > { %500 = vmatpush.bf16.msra.mxu0 %v3600_v2  ;;  %v3788_v8 = vld [vmem:[%s430_s19] ss:$0 sm:$0xff]  ;;  %v4019_v22 = vld [vmem:[%s4391_s1 + $0x8] sm:$0xff]  ;;  %s3873_s11 = smov 88   ;;  %s3874_s12 = smov 64   ;;  %vm656_vm4 = vcmask 1043456  }
  0x1f   : > { %v4012_v18 = vld [vmem:[%s4391_s1] sm:$0xff]  ;;  %s3875_s18 = smov 72   ;;  %s3876_s20 = smov 120  }
  0x20   : > { %s3877_s23 = smov 104   ;;  %s3878_s24 = smov 80   ;;  %v581_v36 = vld [vmem:[%s3965_s25] sm:$0xf] }
  0x21   : > { %s3879_s26 = smov 112   ;;  %v678_v37 = vsel %vm656_vm4, %v581_v36, 0  ;;  %s3880_s28 = smov 56  }
  0x22   : > { %v3997_v4 = vld [vmem:[#allocation2] sm:$0xff]  ;;  %501 = vmatpush.bf16.msra.mxu0 %v3599_v3  ;;  %s3881_s27 = smov 40   ;;  %s3882_s29 = smov 48  }
  0x23   : > { %v3999_v5 = vld [vmem:[#allocation2 + $0x8] sm:$0xff]  ;;  %p3589_p5 = scmp.ne.s32.totalorder %s3946_s14, 1 }
  0x24   : > { %v469_v6 = vpack.c.bf16 %v3999_v5, %v3997_v4 }
  0x26   : > { %2917 = vmatmul.msk.bf16.vlgmr.msra.gmra.mxu0 %vm490_vm1, %v469_v6 }
  0xa3   : > { %v503_v7 = vpop.f32.mrf.mxu0 }
  0xa4   : > { %v504_v9 = vadd.f32 %v3788_v8, %v503_v7 }
  0xa6   : > { %v508_v12 = vmul.f32 0.35355338, %v504_v9 }
  0xab   : > { %v505_v10 = vpop.f32.mrf.mxu0 }
  0xac   : > { %v506_v11 = vadd.f32 %v3788_v8, %v505_v10 }
  0xae   : > { %v509_v13 = vmul.f32 0.35355338, %v506_v11  ;;  %v4004_v14 = vpack.c.bf16 %v506_v11, %v504_v9 }
  0xb0   : > { %v510_v15 = vpack.c.bf16 %v509_v13, %v508_v12  ;;  %513 = vrot.lane.b32.xlu0 %v4004_v14, %s3872_s3 }
 0x122   : > { %v514_v16 = vpop.permute.xlu0 %513 }
 0x123   : > { %v520_v17 = vsel %vm515_vm2, %v514_v16, 0 }
 0x124   : > { %529 = vmatpush.bf16.xpose.msra.mxu1 %v520_v17 }
 0x12b   : > { %2918 = vmatmul.msk.bf16.vlgmr.msra.gmra.mxu1 %vm515_vm2, %v510_v15 }
 0x12c   : > { %687 = vmatpush.bf16.msrb.mxu1 %v678_v37 }
 0x1a8   : > { %v531_v19 = vpop.f32.mrf.mxu1 }
 0x1a9   : > { %v532_v20 = vadd.f32 %v531_v19, %v4012_v18 }
 0x1ab   : > { %v537_v21 = vsel %vm536_vm3, %v532_v20, -inf }
 0x1ac   : > { %538 = vmax.xlane.f32.xlu0 %v537_v21 }
 0x1b0   : > { %v533_v23 = vpop.f32.mrf.mxu1 }
 0x1b1   : > { %v534_v24 = vadd.f32 %v533_v23, %v4019_v22 }
 0x1b3   : > { %v540_v25 = vsel %vm536_vm3, %v534_v24, -inf }
 0x1b4   : > { %541 = vmax.xlane.f32.xlu1 %v540_v25 }
 0x21f   : > { %v539_v26 = vpop.xlane.xlu0 %538 }
 0x220   : > { %v543_v27 = vsub.f32 %v532_v20, %v539_v26 }
 0x222   : > { %v545_v28 = vmul.f32 1.442695, %v543_v27 }
 0x224   : > { %3789 = vpow2.f32 %v545_v28 }
 0x227   : > { %v542_v29 = vpop.xlane.xlu1 %541 }
 0x228   : > { %v544_v30 = vsub.f32 %v534_v24, %v542_v29 }
 0x22a   : > { %v3790_v31 = vpop.eup %3789  ;;  %v547_v32 = vmul.f32 1.442695, %v544_v30 }
 0x22b   : > { %v549_v33 = vsel %vm536_vm3, %v3790_v31, 0.0 }
 0x22c   : > { %3791 = vpow2.f32 %v547_v32  ;;  %550 = vadd.xlane.f32.xlu1 %v549_v33 }
 0x232   : > { %v3792_v34 = vpop.eup %3791 }
 0x233   : > { %v552_v35 = vsel %vm536_vm3, %v3792_v34, 0.0 }
 0x234   : > { %553 = vadd.xlane.f32.xlu2 %v552_v35 }
 0x245   : > { %585 = vrot.lane.b32.xlu1 %v4004_v14, %s3873_s11 }
 0x24c   : > { %560 = vrot.lane.b32.xlu2 %v4004_v14, %s3874_s12 }
 0x24d   : > { %788 = vrot.lane.b32.xlu1 %v4004_v14, %s3875_s18 }
 0x254   : > { %583 = vrot.lane.b32.xlu2 %v510_v15, %s3876_s20 }
 0x255   : > { %786 = vrot.lane.b32.xlu1 %v510_v15, %s3877_s23 }
 0x25c   : > { %696 = vrot.lane.b32.xlu2 %v4004_v14, %s3878_s24 }
 0x264   : > { %694 = vrot.lane.b32.xlu2 %v510_v15, %s3879_s26 }
 0x29f   : > { %v551_v38 = vpop.xlane.xlu1 %550 }
 0x2a0   : > { %3793 = vrcp.f32 %v551_v38 }
 0x2a6   : > { %v3794_v40 = vpop.eup %3793 }
 0x2a7   : > { %v554_v39 = vpop.xlane.xlu2 %553  ;;  %v557_v43 = vmul.f32 %v3794_v40, %v3790_v31 }
 0x2a8   : > { %3795 = vrcp.f32 %v554_v39 }
 0x2ae   : > { %v3796_v41 = vpop.eup %3795 }
 0x2af   : > { %v561_v42 = vpop.permute.xlu2 %560  ;;  %v558_v44 = vmul.f32 %v3796_v41, %v3792_v34 }
 0x2b0   : > { %573 = vmatpush.bf16.msra.mxu2 %v561_v42 }
 0x2b1   : > { %v559_v45 = vpack.c.bf16 %v558_v44, %v557_v43 }
 0x2b3   : > { %2919 = vmatmul.msk.bf16.vlgmr.msra.gmra.mxu2 %vm536_vm3, %v559_v45 }
 0x2b7   : > { %v584_v46 = vpop.permute.xlu2 %583  ;;  %v586_v47 = vpop.permute.xlu1 %585 }
 0x2b8   : > { %v591_v48 = vsel %vm515_vm2, %v586_v47, 0 }
 0x2b9   : > { %600 = vmatpush.bf16.xpose.msra.mxu3 %v591_v48 }
 0x2bf   : > { %v697_v49 = vpop.permute.xlu2 %696  ;;  %v789_v50 = vpop.permute.xlu1 %788 }
 0x2c0   : > { %v794_v51 = vsel %vm515_vm2, %v789_v50, 0  ;;  %2920 = vmatmul.msk.bf16.vlgmr.msra.gmra.mxu3 %vm515_vm2, %v584_v46  ;;  %v702_v52 = vsel %vm515_vm2, %v697_v49, 0 }
 0x2c1   : > { %711 = vmatpush.bf16.xpose.msrb.mxu3 %v702_v52  ;;  %803 = vmatpush.bf16.xpose.msra.mxu1 %v794_v51 }
 0x2c7   : > { %v695_v53 = vpop.permute.xlu2 %694  ;;  %v787_v63 = vpop.permute.xlu1 %786 }
 0x2d0   : > { %2925 = vmatmul.msk.bf16.vlgmr.msrb.gmra.mxu3 %vm515_vm2, %v695_v53 }
 0x336   : > { %v575_v54 = vpop.f32.mrf.mxu2 }
 0x33e   : > { %v577_v55 = vpop.f32.mrf.mxu2 }
 0x33f   : > { %v580_v56 = vpack.c.bf16 %v577_v55, %v575_v54 }
 0x341   : > { %2924 = vmatmul.msk.bf16.vlgmr.msrb.gmra.mxu1 %vm515_vm2, %v580_v56 }
 0x343   : > { %v602_v57 = vpop.f32.mrf.mxu3 }
 0x344   : > { %v603_v58 = vadd.f32 %v602_v57, %v4012_v18  ;;  %v2922_v57 = vld [vmem:[%s3965_s25 + $0x4] sm:$0xf] }
 0x346   : > { %v607_v59 = vsel %vm536_vm3, %v603_v58, -inf }
 0x347   : > { %608 = vmax.xlane.f32.xlu0 %v607_v59 }
 0x34b   : > { %v604_v60 = vpop.f32.mrf.mxu3 }
 0x34c   : > { %v605_v61 = vadd.f32 %v604_v60, %v4019_v22 }
 0x34e   : > { %v610_v62 = vsel %vm536_vm3, %v605_v61, -inf }
 0x34f   : > { %611 = vmax.xlane.f32.xlu2 %v610_v62 }
 0x351   : > { %2929 = vmatmul.msk.bf16.vlgmr.msra.gmra.mxu1 %vm515_vm2, %v787_v63 }
 0x353   : > { %v713_v0 = vpop.f32.mrf.mxu3 }
 0x354   : > { %v714_v1 = vadd.f32 %v713_v0, %v4012_v18 }
 0x356   : > { %v718_v2 = vsel %vm536_vm3, %v714_v1, -inf }
 0x357   : > { %719 = vmax.xlane.f32.xlu0 %v718_v2 }
 0x35b   : > { %v715_v3 = vpop.f32.mrf.mxu3 }
 0x35c   : > { %v716_v6 = vadd.f32 %v715_v3, %v4019_v22 }
 0x35e   : > { %v721_v7 = vsel %vm536_vm3, %v716_v6, -inf }
 0x35f   : > { %722 = vmax.xlane.f32.xlu0 %v721_v7 }
 0x367   : > { %630 = vrot.lane.b32.xlu2 %v4004_v14, %s3880_s28 }
 0x3ba   : > { %v609_v8 = vpop.xlane.xlu0 %608 }
 0x3bb   : > { %v613_v9 = vsub.f32 %v603_v58, %v609_v8  ;;  %v658_v58 = vsel %vm656_vm4, %v2922_v57, 0 }
 0x3bc   : > { %667 = vmatpush.bf16.msrb.mxu0 %v658_v58 }
 0x3bd   : > { %v615_v10 = vmul.f32 1.442695, %v613_v9 }
 0x3be   : > { %v4048_v11 = vpop.f32.mrf.mxu1 }
 0x3bf   : > { %3797 = vpow2.f32 %v615_v10 }
 0x3c2   : > { %v612_v12 = vpop.xlane.xlu2 %611 }
 0x3c3   : > { %v614_v23 = vsub.f32 %v605_v61, %v612_v12 }
 0x3c5   : > { %v3798_v13 = vpop.eup %3797  ;;  %v617_v27 = vmul.f32 1.442695, %v614_v23 }
 0x3c6   : > { %v4050_v15 = vpop.f32.mrf.mxu1  ;;  %v619_v16 = vsel %vm536_vm3, %v3798_v13, 0.0 }
 0x3c7   : > { %620 = vadd.xlane.f32.xlu0 %v619_v16  ;;  %v2931_v16 = vld [vmem:[%s3965_s25 + $0xc] sm:$0xf] }
 0x3ca   : > { %v631_v17 = vpop.permute.xlu2 %630  ;;  %v720_v19 = vpop.xlane.xlu0 %719 }
 0x3cb   : > { %643 = vmatpush.bf16.msrb.mxu2 %v631_v17  ;;  %v724_v31 = vsub.f32 %v714_v1, %v720_v19  ;;  %v860_v17 = vsel %vm656_vm4, %v2931_v16, 0  ;;  %v2927_v19 = vld [vmem:[%s3965_s25 + $0x8] sm:$0xf] }
 0x3cd   : > { %v726_v33 = vmul.f32 1.442695, %v724_v31 }
 0x3ce   : > { %v805_v20 = vpop.f32.mrf.mxu1 }
 0x3cf   : > { %v806_v21 = vadd.f32 %v805_v20, %v4012_v18  ;;  %v768_v20 = vsel %vm656_vm4, %v2927_v19, 0  ;;  %v2943_v19 = vld [vmem:[%s3977_s17 + $0x8] sm:$0xf] }
 0x3d0   : > { %777 = vmatpush.bf16.msra.mxu0 %v768_v20  ;;  %v3610_v20 = vld [vmem:[%s3977_s17 + $0x44] sm:$0xf0] }
 0x3d1   : > { %v810_v24 = vsel %vm536_vm3, %v806_v21, -inf }
 0x3d2   : > { %v723_v25 = vpop.xlane.xlu0 %722  ;;  %811 = vmax.xlane.f32.xlu1 %v810_v24 }
 0x3d3   : > { %v725_v26 = vsub.f32 %v716_v6, %v723_v25 }
 0x3d5   : > { %v728_v28 = vmul.f32 1.442695, %v725_v26 }
 0x3d6   : > { %v807_v29 = vpop.f32.mrf.mxu1 }
 0x3d7   : > { %3799 = vpow2.f32 %v728_v28  ;;  %v808_v30 = vadd.f32 %v807_v29, %v4019_v22 }
 0x3d8   : > { %3801 = vpow2.f32 %v617_v27 }
 0x3d9   : > { %v813_v32 = vsel %vm536_vm3, %v808_v30, -inf  ;;  %3803 = vpow2.f32 %v726_v33 }
 0x3da   : > { %814 = vmax.xlane.f32.xlu0 %v813_v32 }
 0x3dd   : > { %v3800_v34 = vpop.eup %3799 }
 0x3de   : > { %v3802_v18 = vpop.eup %3801  ;;  %v733_v35 = vsel %vm536_vm3, %v3800_v34, 0.0 }
 0x3df   : > { %734 = vadd.xlane.f32.xlu1 %v733_v35  ;;  %v622_v36 = vsel %vm536_vm3, %v3802_v18, 0.0  ;;  %v3804_v37 = vpop.eup %3803 }
 0x3e0   : > { %v730_v38 = vsel %vm536_vm3, %v3804_v37, 0.0 }
 0x3e2   : > { %623 = vadd.xlane.f32.xlu0 %v622_v36 }
 0x3ea   : > { %731 = vadd.xlane.f32.xlu0 %v730_v38 }
 0x43a   : > { %v621_v22 = vpop.xlane.xlu0 %620 }
 0x445   : > { %v812_v39 = vpop.xlane.xlu1 %811 }
 0x446   : > { %v816_v40 = vsub.f32 %v806_v21, %v812_v39 }
 0x448   : > { %v818_v41 = vmul.f32 1.442695, %v816_v40 }
 0x44a   : > { %3805 = vpow2.f32 %v818_v41 }
 0x44d   : > { %v815_v42 = vpop.xlane.xlu0 %814 }
 0x44e   : > { %v817_v43 = vsub.f32 %v808_v30, %v815_v42  ;;  %v4077_v30 = vld [vmem:[%s3972_s30] sm:$0x3f] }
 0x450   : > { %v3806_v44 = vpop.eup %3805  ;;  %v820_v45 = vmul.f32 1.442695, %v817_v43 }
 0x451   : > { %v822_v46 = vsel %vm536_vm3, %v3806_v44, 0.0 }
 0x452   : > { %3807 = vpow2.f32 %v820_v45  ;;  %823 = vadd.xlane.f32.xlu0 %v822_v46  ;;  %v735_v56 = vpop.xlane.xlu1 %734  ;;  %v3883_v45 = vmov 32.0  }
 0x453   : > { %3809 = vrcp.f32 %v621_v22 }
 0x455   : > { %v624_v47 = vpop.xlane.xlu0 %623 }
 0x456   : > { %3811 = vrcp.f32 %v624_v47 }
 0x458   : > { %v3808_v48 = vpop.eup %3807 }
 0x459   : > { %v825_v49 = vsel %vm536_vm3, %v3808_v48, 0.0  ;;  %v3810_v50 = vpop.eup %3809 }
 0x45a   : > { %826 = vadd.xlane.f32.xlu1 %v825_v49  ;;  %v627_v52 = vmul.f32 %v3810_v50, %v3798_v13 }
 0x45c   : > { %v3812_v51 = vpop.eup %3811 }
 0x45d   : > { %v628_v53 = vmul.f32 %v3812_v51, %v3802_v18  ;;  %v732_v55 = vpop.xlane.xlu0 %731  ;;  %v878_v18 = vperm.slane %v4077_v30, 0 }
 0x45f   : > { %v629_v54 = vpack.c.bf16 %v628_v53, %v627_v52 }
 0x461   : > { %2921 = vmatmul.msk.bf16.vlgmr.msrb.gmra.mxu2 %vm536_vm3, %v629_v54 }
 0x466   : > { %833 = vrot.lane.b32.xlu0 %v4004_v14, %s3881_s27 }
 0x473   : > { %741 = vrot.lane.b32.xlu1 %v4004_v14, %s3882_s29 }
 0x4c5   : > { %v824_v59 = vpop.xlane.xlu0 %823 }
 0x4cd   : > { %v827_v60 = vpop.xlane.xlu1 %826 }
 0x4ce   : > { %3813 = vrcp.f32 %v827_v60  ;;  %v3625_v60 = vld [vmem:[%s3977_s17 + $0xbc] sm:$0xf0] }
 0x4cf   : > { %3815 = vrcp.f32 %v824_v59  ;;  %v2999_v59 = vld [vmem:[%s3977_s17 + $0x80] sm:$0xf] }
 0x4d0   : > { %3817 = vrcp.f32 %v732_v55 }
 0x4d1   : > { %3819 = vrcp.f32 %v735_v56 }
 0x4d2   : > { %3821 = vrcp.f32 %v3883_v45 }
 0x4d4   : > { %v3814_v61 = vpop.eup %3813 }
 0x4d5   : > { %v3816_v62 = vpop.eup %3815  ;;  %v831_v63 = vmul.f32 %v3814_v61, %v3808_v48  ;;  %v3617_v61 = vld [vmem:[%s3977_s17 + $0x84] sm:$0xf] }
 0x4d6   : > { %v830_v0 = vmul.f32 %v3816_v62, %v3806_v44  ;;  %v3818_v14 = vpop.eup %3817  ;;  %v3000_v62 = vor.u32 %v3625_v60, %v2999_v59 }
 0x4d7   : > { %v3820_v3 = vpop.eup %3819  ;;  %v738_v6 = vmul.f32 %v3818_v14, %v3804_v37 }
 0x4d8   : > { %v834_v1 = vpop.permute.xlu0 %833  ;;  %v832_v2 = vpack.c.bf16 %v831_v63, %v830_v0  ;;  %v739_v8 = vmul.f32 %v3820_v3, %v3800_v34  ;;  %v3822_v46 = vpop.eup %3821  ;;  %v3001_v63 = vld [vmem:[%s3977_s17 + $0xc0] sm:$0xf0]  ;;  %v3007_v0 = vld [vmem:[%s3977_s17 + $0x88] sm:$0xf]  ;;  %v3618_v3 = vld [vmem:[%s3977_s17 + $0x8c] sm:$0xf] }
 0x4d9   : > { %846 = vmatpush.bf16.msra.mxu3 %v834_v1  ;;  %v890_v47 = vmul.f32 32.0, %v3822_v46  ;;  %vm894_vm5 = vweird.f32 %v3822_v46  ;;  %v3626_v1 = vld [vmem:[%s3977_s17 + $0xc4] sm:$0xf0] }
 0x4da   : > { %v740_v10 = vpack.c.bf16 %v739_v8, %v738_v6  ;;  %v3008_v14 = vor.u32 %v3626_v1, %v3007_v0  ;;  %v3009_v6 = vld [vmem:[%s3977_s17 + $0xc8] sm:$0xf0]  ;;  %v934_v1 = vperm.slane %v4077_v30, 2 }
 0x4db   : > { %v3012_v8 = vor.u32 %v3618_v3, %v3009_v6  ;;  %v937_v6 = vperm.slane %v4077_v30, 3  ;;  %v3630_v30 = vld [vmem:[%s3977_s17 + $0xe4] sm:$0xf0] }
 0x4dc   : > { %2930 = vmatmul.msk.bf16.vlgmr.msra.gmra.mxu3 %vm536_vm3, %v832_v2  ;;  %v3004_v2 = vor.u32 %v3617_v61, %v3001_v63 }
 0x4dd   : > { %1206 = vmatpush.bf16.msrb.mxu3 %v3008_v14 }
 0x4de   : > { %1192 = vmatpush.bf16.msrb.mxu1 %v3004_v2 }
 0x4e4   : > { %v645_v7 = vpop.f32.mrf.mxu2 }
 0x4e5   : > { %v742_v9 = vpop.permute.xlu1 %741 }
 0x4e6   : > { %754 = vmatpush.bf16.msra.mxu2 %v742_v9 }
 0x4e9   : > { %2926 = vmatmul.msk.bf16.vlgmr.msra.gmra.mxu2 %vm536_vm3, %v740_v10  ;;  %v2935_v10 = vld [vmem:[%s3977_s17] sm:$0xf] }
 0x4ea   : > { %869 = vmatpush.bf16.msrb.mxu2 %v860_v17  ;;  %v2937_v17 = vld [vmem:[%s3977_s17 + $0x40] sm:$0xf0] }
 0x4ec   : > { %v647_v12 = vpop.f32.mrf.mxu2 }
 0x4ed   : > { %v650_v13 = vpack.c.bf16 %v647_v12, %v645_v7  ;;  %v3609_v12 = vld [vmem:[%s3977_s17 + $0x3c] sm:$0xf0] }
 0x4ee   : > { %1220 = vmatpush.bf16.msra.mxu2 %v3012_v8  ;;  %v2936_v16 = vor.u32 %v3609_v12, %v2935_v10  ;;  %v3031_v10 = vld [vmem:[%s3977_s17 + $0xa0] sm:$0xf] }
 0x4ef   : > { %2923 = vmatmul.msk.bf16.vlgmr.msrb.gmra.mxu0 %vm515_vm2, %v650_v13  ;;  %v3601_v13 = vld [vmem:[%s3977_s17 + $0x4] sm:$0xf]  ;;  %v3629_v12 = vld [vmem:[%s3977_s17 + $0xdc] sm:$0xf0] }
 0x4f0   : > { %1178 = vmatpush.bf16.msrb.mxu0 %v3000_v62 }
 0x4f4   : > { %1179 = vmatpush.bf16.msrb.mxu0 %v2936_v16  ;;  %v3039_v16 = vld [vmem:[%s3977_s17 + $0xa8] sm:$0xf] }
 0x55f   : > { %v848_v21 = vpop.f32.mrf.mxu3 }
 0x567   : > { %v850_v23 = vpop.f32.mrf.mxu3 }
 0x568   : > { %v853_v24 = vpack.c.bf16 %v850_v23, %v848_v21  ;;  %v2940_v23 = vor.u32 %v3601_v13, %v2937_v17  ;;  %v3621_v13 = vld [vmem:[%s3977_s17 + $0xa4] sm:$0xf] }
 0x56a   : > { %2932 = vmatmul.msk.bf16.vlgmr.msrb.gmra.mxu2 %vm515_vm2, %v853_v24  ;;  %v2944_v24 = vor.u32 %v3610_v20, %v2943_v19  ;;  %1193 = vmatpush.bf16.msrb.mxu1 %v2940_v23  ;;  %v3622_v20 = vld [vmem:[%s3977_s17 + $0xac] sm:$0xf]  ;;  %v3032_v23 = vor.u32 %v3629_v12, %v3031_v10  ;;  %v3637_v10 = vld [vmem:[%s3988_s4 + $0x20] sm:$0xff] }
 0x56b   : > { %v3645_v12 = vld [vmem:[%s3988_s4 + $0x60] sm:$0xff] }
 0x56c   : > { %v756_v25 = vpop.f32.mrf.mxu2  ;;  %v669_v28 = vpop.f32.mrf.mxu0  ;;  %1207 = vmatpush.bf16.msrb.mxu3 %v2944_v24 }
 0x56d   : > { %v690_v31 = vadd.f32 %v4048_v11, %v669_v28 }
 0x574   : > { %v758_v26 = vpop.f32.mrf.mxu2  ;;  %v671_v29 = vpop.f32.mrf.mxu0 }
 0x575   : > { %v761_v27 = vpack.c.bf16 %v758_v26, %v756_v25  ;;  %v692_v37 = vadd.f32 %v4050_v15, %v671_v29  ;;  %v891_v15 = vsub.f32 1.0, %v890_v47  ;;  %v3602_v25 = vld [vmem:[%s3977_s17 + $0xc] sm:$0xf]  ;;  %v3015_v29 = vld [vmem:[%s3977_s17 + $0x90] sm:$0xf] }
 0x576   : > { %v2945_v26 = vld [vmem:[%s3977_s17 + $0x48] sm:$0xf0]  ;;  %v2953_v47 = vld [vmem:[%s3977_s17 + $0x50] sm:$0xf0] }
 0x577   : > { %2928 = vmatmul.msk.bf16.vlgmr.msra.gmra.mxu0 %vm515_vm2, %v761_v27  ;;  %v892_v48 = vmul.f32 %v3822_v46, %v891_v15  ;;  %v2948_v27 = vor.u32 %v3602_v25, %v2945_v26  ;;  %v2959_v15 = vld [vmem:[%s3977_s17 + $0x18] sm:$0xf]  ;;  %v2967_v25 = vld [vmem:[%s3977_s17 + $0x20] sm:$0xf] }
 0x578   : > { %v3613_v26 = vld [vmem:[%s3977_s17 + $0x5c] sm:$0xf0] }
 0x579   : > { %1221 = vmatpush.bf16.msra.mxu2 %v2948_v27  ;;  %v3040_v27 = vor.u32 %v3630_v30, %v3039_v16  ;;  %v3636_v16 = vld [vmem:[%s3988_s4 + $0x18] sm:$0xff] }
 0x57a   : > { %v3644_v30 = vld [vmem:[%s3988_s4 + $0x58] sm:$0xff] }
 0x5ed   : > { %v871_v32 = vpop.f32.mrf.mxu2 }
 0x5f4   : > { %v779_v33 = vpop.f32.mrf.mxu0 }
 0x5f5   : > { %v784_v34 = vadd.f32 %v779_v33, %v690_v31  ;;  %v873_v41 = vpop.f32.mrf.mxu2  ;;  %v3627_v31 = vld [vmem:[%s3977_s17 + $0xcc] sm:$0xf0] }
 0x5f7   : > { %v876_v35 = vadd.f32 %v871_v32, %v784_v34  ;;  %v3619_v32 = vld [vmem:[%s3977_s17 + $0x94] sm:$0xf]  ;;  %v3016_v34 = vor.u32 %v3627_v31, %v3015_v29  ;;  %v3605_v29 = vld [vmem:[%s3977_s17 + $0x24] sm:$0xf] }
 0x5f8   : > { %v2969_v31 = vld [vmem:[%s3977_s17 + $0x60] sm:$0xf0] }
 0x5f9   : > { %v879_v36 = vadd.f32 %v878_v18, %v876_v35  ;;  %v3023_v35 = vld [vmem:[%s3977_s17 + $0x98] sm:$0xf]  ;;  %1234 = vmatpush.bf16.msra.mxu0 %v3016_v34  ;;  %v3606_v34 = vld [vmem:[%s3977_s17 + $0x2c] sm:$0xf] }
 0x5fb   : > { %v881_v38 = vadd.f32 %v879_v36, %v3997_v4  ;;  %v893_v4 = vadd.f32 %v3822_v46, %v892_v48  ;;  %v3628_v36 = vld [vmem:[%s3977_s17 + $0xd4] sm:$0xf0] }
 0x5fc   : > { %v781_v22 = vpop.f32.mrf.mxu0  ;;  %v3612_v48 = vld [vmem:[%s3977_s17 + $0x54] sm:$0xf0] }
 0x5fd   : > { %v785_v39 = vadd.f32 %v781_v22, %v692_v37  ;;  %v883_v40 = vsel %vm490_vm1, %v881_v38, 0.0  ;;  %v4086_v49 = vsel %vm894_vm5, %v3822_v46, %v893_v4  ;;  %v3620_v22 = vld [vmem:[%s3977_s17 + $0x9c] sm:$0xf] }
 0x5fe   : > { %884 = vadd.xlane.f32.xlu2 %v883_v40  ;;  %v2951_v40 = vld [vmem:[%s3977_s17 + $0x10] sm:$0xf] }
 0x5ff   : > { %v877_v42 = vadd.f32 %v873_v41, %v785_v39  ;;  %v3025_v39 = vld [vmem:[%s3977_s17 + $0xd8] sm:$0xf0] }
 0x601   : > { %v880_v43 = vadd.f32 %v878_v18, %v877_v42  ;;  %v3017_v18 = vld [vmem:[%s3977_s17 + $0xd0] sm:$0xf0] }
 0x602   : > { %v3020_v37 = vor.u32 %v3619_v32, %v3017_v18  ;;  %v2975_v32 = vld [vmem:[%s3977_s17 + $0x28] sm:$0xf]  ;;  %v2977_v18 = vld [vmem:[%s3977_s17 + $0x68] sm:$0xf0] }
 0x603   : > { %v882_v11 = vadd.f32 %v880_v43, %v3999_v5  ;;  %v3028_v43 = vor.u32 %v3620_v22, %v3025_v39  ;;  %v3047_v22 = vld [vmem:[%s3977_s17 + $0xb0] sm:$0xf] }
 0x604   : > { %1248 = vmatpush.bf16.msra.mxu1 %v3020_v37  ;;  %v3631_v39 = vld [vmem:[%s3977_s17 + $0xec] sm:$0xf0] }
 0x605   : > { %v886_v44 = vsel %vm490_vm1, %v882_v11, 0.0  ;;  %1276 = vmatpush.bf16.msrb.mxu2 %v3028_v43  ;;  %v3632_v43 = vld [vmem:[%s3977_s17 + $0xf4] sm:$0xf0] }
 0x606   : > { %887 = vadd.xlane.f32.xlu0 %v886_v44  ;;  %v3603_v44 = vld [vmem:[%s3977_s17 + $0x14] sm:$0xf] }
 0x607   : > { %v2956_v4 = vor.u32 %v3603_v44, %v2953_v47  ;;  %v3057_v44 = vld [vmem:[%s3977_s17 + $0xf8] sm:$0xf0]  ;;  %v2983_v47 = vld [vmem:[%s3977_s17 + $0x30] sm:$0xf] }
 0x609   : > { %1249 = vmatpush.bf16.msra.mxu1 %v2956_v4 }
 0x671   : > { %v885_v50 = vpop.xlane.xlu2 %884 }
 0x672   : > { %v896_v5 = vmul.f32 %v4086_v49, %v885_v50  ;;  %v2960_v50 = vor.u32 %v3612_v48, %v2959_v15  ;;  %v3615_v15 = vld [vmem:[%s3977_s17 + $0x6c] sm:$0xf0] }
 0x674   : > { %v4089_v51 = vsub.f32 %v881_v38, %v896_v5  ;;  %v3024_v38 = vor.u32 %v3628_v36, %v3023_v35  ;;  %v3604_v5 = vld [vmem:[%s3977_s17 + $0x1c] sm:$0xf]  ;;  %v2968_v35 = vor.u32 %v3613_v26, %v2967_v25  ;;  %v2972_v36 = vor.u32 %v3605_v29, %v2969_v31  ;;  %v3651_v25 = vld [vmem:[%s3988_s4 + $0x90] sm:$0xff]  ;;  %v3658_v29 = vld [vmem:[%s3988_s4 + $0xc8] sm:$0xff] }
 0x675   : > { %v3659_v26 = vld [vmem:[%s3988_s4 + $0xd0] sm:$0xff]  ;;  %v3633_v31 = vld [vmem:[%s3988_s4] sm:$0xff] }
 0x676   : > { %v900_v52 = vmul.f32 %v4089_v51, %v4089_v51  ;;  %1262 = vmatpush.bf16.msra.mxu3 %v3024_v38  ;;  %v2980_v38 = vor.u32 %v3606_v34, %v2977_v18  ;;  %v3680_v34 = vld [vmem:[%s3988_s4 + $0x178] sm:$0xff]  ;;  %v3649_v18 = vld [vmem:[%s3988_s4 + $0x80] sm:$0xff] }
 0x678   : > { %v902_v53 = vsel %vm490_vm1, %v900_v52, 0.0  ;;  %v2961_v52 = vld [vmem:[%s3977_s17 + $0x58] sm:$0xf0] }
 0x679   : > { %903 = vadd.xlane.f32.xlu1 %v902_v53  ;;  %v888_v54 = vpop.xlane.xlu0 %887 }
 0x67a   : > { %v897_v55 = vmul.f32 %v4086_v49, %v888_v54  ;;  %v2964_v54 = vor.u32 %v3604_v5, %v2961_v52  ;;  %1263 = vmatpush.bf16.msra.mxu3 %v2960_v50  ;;  %v3607_v50 = vld [vmem:[%s3977_s17 + $0x34] sm:$0xf]  ;;  %v2991_v52 = vld [vmem:[%s3977_s17 + $0x38] sm:$0xf] }
 0x67b   : > { %v2985_v5 = vld [vmem:[%s3977_s17 + $0x70] sm:$0xf0] }
 0x67c   : > { %v4095_v56 = vsub.f32 %v882_v11, %v897_v55  ;;  %v3611_v11 = vld [vmem:[%s3977_s17 + $0x4c] sm:$0xf0]  ;;  %1277 = vmatpush.bf16.msrb.mxu2 %v2964_v54  ;;  %v3608_v54 = vld [vmem:[%s3977_s17 + $0x3c] sm:$0xf] }
 0x67d   : > { %v2952_v46 = vor.u32 %v3611_v11, %v2951_v40  ;;  %v3623_v40 = vld [vmem:[%s3977_s17 + $0xb4] sm:$0xf]  ;;  %v3624_v11 = vld [vmem:[%s3977_s17 + $0xbc] sm:$0xf] }
 0x67e   : > { %v901_v57 = vmul.f32 %v4095_v56, %v4095_v56  ;;  %v3060_v4 = vor.u32 %v3624_v11, %v3057_v44  ;;  %v3677_v11 = vld [vmem:[%s3988_s4 + $0x160] sm:$0xff]  ;;  %v3686_v44 = vld [vmem:[%s3988_s4 + $0x1a8] sm:$0xff] }
 0x67f   : > { %1235 = vmatpush.bf16.msra.mxu0 %v2952_v46 }
 0x680   : > { %v905_v58 = vsel %vm490_vm1, %v901_v57, 0.0 }
 0x681   : > { %906 = vadd.xlane.f32.xlu2 %v905_v58 }
 0x6ec   : > { %v904_v7 = vpop.xlane.xlu1 %903 }
 0x6ed   : > { %v908_v9 = vmul.f32 %v904_v7, %v4086_v49 }
 0x6ef   : > { %v910_v21 = vadd.f32 1e-05, %v908_v9 }
 0x6f1   : > { %3823 = vrsqrt.f32 %v910_v21  ;;  %vm918_vm7 = vweird.f32 %v910_v21 }
 0x6f4   : > { %v907_v28 = vpop.xlane.xlu2 %906 }
 0x6f5   : > { %v909_v33 = vmul.f32 %v907_v28, %v4086_v49 }
 0x6f7   : > { %v3824_v41 = vpop.eup %3823  ;;  %v911_v42 = vadd.f32 1e-05, %v909_v33  ;;  %v3614_v33 = vld [vmem:[%s3977_s17 + $0x64] sm:$0xf0] }
 0x6f8   : > { %v913_v45 = vmul.f32 %v3824_v41, %v910_v21  ;;  %vm919_vm6 = vweird.f32 %v3824_v41  ;;  %v2976_v37 = vor.u32 %v3614_v33, %v2975_v32  ;;  %v3641_v32 = vld [vmem:[%s3988_s4 + $0x40] sm:$0xff]  ;;  %v3672_v33 = vld [vmem:[%s3988_s4 + $0x138] sm:$0xff] }
 0x6f9   : > { %3825 = vrsqrt.f32 %v911_v42  ;;  %vm920_vm8 = vmor %vm918_vm7, %vm919_vm6  ;;  %vm928_vm10 = vweird.f32 %v911_v42 }
 0x6fa   : > { %v914_v53 = vmul.f32 %v3824_v41, %v913_v45  ;;  %v3048_v45 = vor.u32 %v3631_v39, %v3047_v22  ;;  %v3679_v22 = vld [vmem:[%s3988_s4 + $0x170] sm:$0xff] }
 0x6fb   : > { %v3687_v39 = vld [vmem:[%s3988_s4 + $0x1b0] sm:$0xff] }
 0x6fc   : > { %v915_v55 = vmul.f32 0.5, %v914_v53  ;;  %v3616_v53 = vld [vmem:[%s3977_s17 + $0x74] sm:$0xf0] }
 0x6fe   : > { %v916_v57 = vsub.f32 1.5, %v915_v55  ;;  %v2993_v55 = vld [vmem:[%s3977_s17 + $0x78] sm:$0xf0] }
 0x6ff   : > { %v3826_v58 = vpop.eup %3825 }
 0x700   : > { %v917_v59 = vmul.f32 %v3824_v41, %v916_v57  ;;  %v923_v60 = vmul.f32 %v3826_v58, %v911_v42  ;;  %vm929_vm9 = vweird.f32 %v3826_v58  ;;  %v3055_v42 = vld [vmem:[%s3977_s17 + $0xb8] sm:$0xf]  ;;  %v2984_v57 = vor.u32 %v3615_v15, %v2983_v47  ;;  %v3685_v15 = vld [vmem:[%s3988_s4 + $0x1a0] sm:$0xff] }
 0x701   : > { %vm930_vm11 = vmor %vm928_vm10, %vm929_vm9  ;;  %v3056_v48 = vor.u32 %v3632_v43, %v3055_v42  ;;  %v3678_v42 = vld [vmem:[%s3988_s4 + $0x168] sm:$0xff]  ;;  %v3669_v43 = vld [vmem:[%s3988_s4 + $0x120] sm:$0xff] }
 0x702   : > { %v924_v61 = vmul.f32 %v3826_v58, %v923_v60  ;;  %v921_v62 = vsel %vm920_vm8, %v3824_v41, %v917_v59  ;;  %v3049_v41 = vld [vmem:[%s3977_s17 + $0xf0] sm:$0xf0]  ;;  %v2992_v59 = vor.u32 %v3616_v53, %v2991_v52  ;;  %v2996_v60 = vor.u32 %v3608_v54, %v2993_v55  ;;  %v3676_v47 = vld [vmem:[%s3988_s4 + $0x158] sm:$0xff]  ;;  %v3666_v53 = vld [vmem:[%s3988_s4 + $0x108] sm:$0xff] }
 0x703   : > { %v932_v2 = vmul.f32 %v921_v62, %v4089_v51  ;;  %v3033_v51 = vld [vmem:[%s3977_s17 + $0xe0] sm:$0xf0]  ;;  %v3052_v46 = vor.u32 %v3623_v40, %v3049_v41  ;;  %v3648_v62 = vld [vmem:[%s3988_s4 + $0x78] sm:$0xff]  ;;  %v3695_v40 = vld [vmem:[%s3988_s4 + $0x1f0] sm:$0xff] }
 0x704   : > { %v925_v63 = vmul.f32 0.5, %v924_v61  ;;  %v3036_v24 = vor.u32 %v3621_v13, %v3033_v51  ;;  %v3640_v61 = vld [vmem:[%s3988_s4 + $0x38] sm:$0xff]  ;;  %v3653_v13 = vld [vmem:[%s3988_s4 + $0xa0] sm:$0xff]  ;;  %v3670_v41 = vld [vmem:[%s3988_s4 + $0x128] sm:$0xff] }
 0x705   : > { %v935_v7 = vmul.f32 %v934_v1, %v932_v2  ;;  %v3647_v2 = vld [vmem:[%s3988_s4 + $0x70] sm:$0xff]  ;;  %v3661_v51 = vld [vmem:[%s3988_s4 + $0xe0] sm:$0xff]  ;;  %v3692_v52 = vld [vmem:[%s3988_s4 + $0x1d8] sm:$0xff] }
 0x706   : > { %v926_v0 = vsub.f32 1.5, %v925_v63  ;;  %v3656_v63 = vld [vmem:[%s3988_s4 + $0xb8] sm:$0xff]  ;;  %v3674_v54 = vld [vmem:[%s3988_s4 + $0x148] sm:$0xff]  ;;  %v3683_v55 = vld [vmem:[%s3988_s4 + $0x190] sm:$0xff] }
 0x707   : > { %v4143_v17 = vadd.f32 %v937_v6, %v935_v7  ;;  %v3646_v7 = vld [vmem:[%s3988_s4 + $0x68] sm:$0xff] }
 0x708   : > { %v927_v14 = vmul.f32 %v3826_v58, %v926_v0  ;;  %v3664_v0 = vld [vmem:[%s3988_s4 + $0xf8] sm:$0xff] }
 0x70a   : > { %v931_v3 = vsel %vm930_vm11, %v3826_v58, %v927_v14  ;;  %v2988_v58 = vor.u32 %v3607_v50, %v2985_v5  ;;  %v3655_v14 = vld [vmem:[%s3988_s4 + $0xb0] sm:$0xff]  ;;  %v3684_v5 = vld [vmem:[%s3988_s4 + $0x198] sm:$0xff] }
 0x70b   : > { %v933_v8 = vmul.f32 %v931_v3, %v4095_v56  ;;  %v3041_v56 = vld [vmem:[%s3977_s17 + $0xe8] sm:$0xf0]  ;;  %v3663_v3 = vld [vmem:[%s3988_s4 + $0xf0] sm:$0xff] }
 0x70c   : > { %v3044_v28 = vor.u32 %v3622_v20, %v3041_v56  ;;  %v3652_v20 = vld [vmem:[%s3988_s4 + $0x98] sm:$0xff]  ;;  %v3675_v50 = vld [vmem:[%s3988_s4 + $0x150] sm:$0xff] }
 0x70d   : > { %v936_v9 = vmul.f32 %v934_v1, %v933_v8  ;;  %v3639_v1 = vld [vmem:[%s3988_s4 + $0x30] sm:$0xff]  ;;  %v3654_v8 = vld [vmem:[%s3988_s4 + $0xa8] sm:$0xff]  ;;  %v3660_v56 = vld [vmem:[%s3988_s4 + $0xd8] sm:$0xff] }
 0x70f   : > { %v4145_v19 = vadd.f32 %v937_v6, %v936_v9  ;;  %v3638_v6 = vld [vmem:[%s3988_s4 + $0x28] sm:$0xff] }
 0x710   : > { %v3662_v9 = vld [vmem:[%s3988_s4 + $0xe8] sm:$0xff] }
 0x711   : > { %v4152_v21 = vpack.c.bf16 %v4145_v19, %v4143_v17 }
 0x713   : > { %3061 = vmatmul.msk.bf16.vlgmr.msrb.gmra.mxu0 %vm490_vm1, %v4152_v21  ;;  %3062 = vmatmul.msk.bf16.vlgmr.msrb.gmra.mxu1 %vm490_vm1, %v4152_v21 }
 0x714   : > { %3063 = vmatmul.msk.bf16.vlgmr.msrb.gmra.mxu3 %vm490_vm1, %v4152_v21  ;;  %3064 = vmatmul.msk.bf16.vlgmr.msra.gmra.mxu2 %vm490_vm1, %v4152_v21 }
 0x715   : > { %1290 = vmatpush.bf16.msrb.mxu0 %v3032_v23  ;;  %1304 = vmatpush.bf16.msrb.mxu1 %v3036_v24  ;;  %v3635_v23 = vld [vmem:[%s3988_s4 + $0x10] sm:$0xff] }
 0x716   : > { %1318 = vmatpush.bf16.msrb.mxu3 %v3040_v27  ;;  %1332 = vmatpush.bf16.msra.mxu2 %v3044_v28  ;;  %v3643_v24 = vld [vmem:[%s3988_s4 + $0x50] sm:$0xff]  ;;  %v3634_v27 = vld [vmem:[%s3988_s4 + $0x8] sm:$0xff] }
 0x717   : > { %v3650_v28 = vld [vmem:[%s3988_s4 + $0x88] sm:$0xff] }
 0x719   : > { %1291 = vmatpush.bf16.msrb.mxu0 %v2968_v35  ;;  %1305 = vmatpush.bf16.msrb.mxu1 %v2972_v36  ;;  %v3657_v35 = vld [vmem:[%s3988_s4 + $0xc0] sm:$0xff]  ;;  %v3688_v36 = vld [vmem:[%s3988_s4 + $0x1b8] sm:$0xff] }
 0x71a   : > { %1319 = vmatpush.bf16.msrb.mxu3 %v2976_v37  ;;  %1333 = vmatpush.bf16.msra.mxu2 %v2980_v38  ;;  %v3696_v37 = vld [vmem:[%s3988_s4 + $0x1f8] sm:$0xff]  ;;  %v3671_v38 = vld [vmem:[%s3988_s4 + $0x130] sm:$0xff] }
 0x723   : > { %3065 = vmatmul.msk.bf16.vlgmr.msra.gmra.mxu0 %vm490_vm1, %v4152_v21  ;;  %3066 = vmatmul.msk.bf16.vlgmr.msra.gmra.mxu1 %vm490_vm1, %v4152_v21 }
 0x724   : > { %3067 = vmatmul.msk.bf16.vlgmr.msra.gmra.mxu3 %vm490_vm1, %v4152_v21  ;;  %3068 = vmatmul.msk.bf16.vlgmr.msrb.gmra.mxu2 %vm490_vm1, %v4152_v21 }
 0x725   : > { %1346 = vmatpush.bf16.msra.mxu0 %v3048_v45  ;;  %1360 = vmatpush.bf16.msra.mxu1 %v3052_v46  ;;  %v3694_v45 = vld [vmem:[%s3988_s4 + $0x1e8] sm:$0xff]  ;;  %v3668_v46 = vld [vmem:[%s3988_s4 + $0x118] sm:$0xff] }
 0x726   : > { %1374 = vmatpush.bf16.msra.mxu3 %v3056_v48  ;;  %1388 = vmatpush.bf16.msrb.mxu2 %v3060_v4  ;;  %v3693_v48 = vld [vmem:[%s3988_s4 + $0x1e0] sm:$0xff]  ;;  %v3667_v4 = vld [vmem:[%s3988_s4 + $0x110] sm:$0xff] }
 0x729   : > { %1347 = vmatpush.bf16.msra.mxu0 %v2984_v57  ;;  %1361 = vmatpush.bf16.msra.mxu1 %v2988_v58  ;;  %v3691_v57 = vld [vmem:[%s3988_s4 + $0x1d0] sm:$0xff]  ;;  %v3665_v58 = vld [vmem:[%s3988_s4 + $0x100] sm:$0xff] }
 0x72a   : > { %1375 = vmatpush.bf16.msra.mxu3 %v2992_v59  ;;  %1389 = vmatpush.bf16.msrb.mxu2 %v2996_v60  ;;  %v3673_v59 = vld [vmem:[%s3988_s4 + $0x140] sm:$0xff]  ;;  %v3682_v60 = vld [vmem:[%s3988_s4 + $0x188] sm:$0xff] }
 0x733   : > { %3069 = vmatmul.msk.bf16.vlgmr.msrb.gmra.mxu0 %vm490_vm1, %v4152_v21  ;;  %3070 = vmatmul.msk.bf16.vlgmr.msrb.gmra.mxu1 %vm490_vm1, %v4152_v21 }
 0x734   : > { %3071 = vmatmul.msk.bf16.vlgmr.msrb.gmra.mxu3 %vm490_vm1, %v4152_v21  ;;  %3072 = vmatmul.msk.bf16.vlgmr.msra.gmra.mxu2 %vm490_vm1, %v4152_v21 }
 0x735   : > { %2469 = vmatpush.bf16.msrb.mxu0 %v3640_v61  ;;  %2483 = vmatpush.bf16.msrb.mxu1 %v3648_v62  ;;  %v3690_v61 = vld [vmem:[%s3988_s4 + $0x1c8] sm:$0xff]  ;;  %v3681_v62 = vld [vmem:[%s3988_s4 + $0x180] sm:$0xff] }
 0x736   : > { %2497 = vmatpush.bf16.msrb.mxu3 %v3656_v63  ;;  %2511 = vmatpush.bf16.msra.mxu2 %v3664_v0  ;;  %v3689_v63 = vld [vmem:[%s3988_s4 + $0x1c0] sm:$0xff] }
 0x737   : > { %v4275_v0 = vld [vmem:[%s3982_s21] sm:$0xff] }
 0x739   : > { %2470 = vmatpush.bf16.msrb.mxu0 %v3639_v1  ;;  %2484 = vmatpush.bf16.msrb.mxu1 %v3647_v2 }
 0x73a   : > { %2498 = vmatpush.bf16.msrb.mxu3 %v3655_v14  ;;  %2512 = vmatpush.bf16.msra.mxu2 %v3663_v3  ;;  %v977_v14 = vperm.slane %v4275_v0, 0  ;;  %v978_v3 = vperm.slane %v4275_v0, 1 }
 0x73d   : > { %2471 = vmatpush.bf16.msrb.mxu0 %v3638_v6  ;;  %2485 = vmatpush.bf16.msrb.mxu1 %v3646_v7 }
 0x73e   : > { %2499 = vmatpush.bf16.msrb.mxu3 %v3654_v8  ;;  %2513 = vmatpush.bf16.msra.mxu2 %v3662_v9 }
 0x741   : > { %2472 = vmatpush.bf16.msrb.mxu0 %v3637_v10  ;;  %2486 = vmatpush.bf16.msrb.mxu1 %v3645_v12 }
 0x742   : > { %2500 = vmatpush.bf16.msrb.mxu3 %v3653_v13  ;;  %2514 = vmatpush.bf16.msra.mxu2 %v3661_v51 }
 0x743   : > { %3073 = vmatmul.msk.bf16.vlgmr.msra.gmra.mxu0 %vm490_vm1, %v4152_v21  ;;  %3074 = vmatmul.msk.bf16.vlgmr.msra.gmra.mxu1 %vm490_vm1, %v4152_v21 }
 0x744   : > { %3075 = vmatmul.msk.bf16.vlgmr.msra.gmra.mxu3 %vm490_vm1, %v4152_v21  ;;  %3076 = vmatmul.msk.bf16.vlgmr.msrb.gmra.mxu2 %vm490_vm1, %v4152_v21  ;;  %v3642_v21 = vld [vmem:[%s3988_s4 + $0x48] sm:$0xff] }
 0x745   : > { %2473 = vmatpush.bf16.msrb.mxu0 %v3636_v16  ;;  %2487 = vmatpush.bf16.msrb.mxu1 %v3644_v30  ;;  %v979_v16 = vperm.slane %v4275_v0, 2  ;;  %v980_v30 = vperm.slane %v4275_v0, 3 }
 0x746   : > { %2501 = vmatpush.bf16.msrb.mxu3 %v3652_v20  ;;  %2515 = vmatpush.bf16.msra.mxu2 %v3660_v56 }
 0x749   : > { %2474 = vmatpush.bf16.msrb.mxu0 %v3635_v23  ;;  %2488 = vmatpush.bf16.msrb.mxu1 %v3643_v24 }
 0x74a   : > { %2502 = vmatpush.bf16.msrb.mxu3 %v3651_v25  ;;  %2516 = vmatpush.bf16.msra.mxu2 %v3659_v26  ;;  %v3704_v25 = vld [vmem:[%s3988_s4 + $0x238] sm:$0xff] }
 0x74b   : > { %v3712_v26 = vld [vmem:[%s3988_s4 + $0x278] sm:$0xff] }
 0x74d   : > { %2475 = vmatpush.bf16.msrb.mxu0 %v3634_v27  ;;  %2489 = vmatpush.bf16.msrb.mxu1 %v3642_v21 }
 0x74e   : > { %2503 = vmatpush.bf16.msrb.mxu3 %v3650_v28  ;;  %2517 = vmatpush.bf16.msra.mxu2 %v3658_v29 }
 0x751   : > { %2476 = vmatpush.bf16.msrb.mxu0 %v3633_v31  ;;  %2490 = vmatpush.bf16.msrb.mxu1 %v3641_v32 }
 0x752   : > { %2504 = vmatpush.bf16.msrb.mxu3 %v3649_v18  ;;  %2518 = vmatpush.bf16.msra.mxu2 %v3657_v35 }
 0x755   : > { %2525 = vmatpush.bf16.msra.mxu0 %v3672_v33  ;;  %2539 = vmatpush.bf16.msra.mxu1 %v3680_v34 }
 0x756   : > { %2553 = vmatpush.bf16.msra.mxu3 %v3688_v36  ;;  %2567 = vmatpush.bf16.msrb.mxu2 %v3696_v37  ;;  %v3703_v36 = vld [vmem:[%s3988_s4 + $0x230] sm:$0xff] }
 0x757   : > { %v3711_v37 = vld [vmem:[%s3988_s4 + $0x270] sm:$0xff] }
 0x759   : > { %2526 = vmatpush.bf16.msra.mxu0 %v3671_v38  ;;  %2540 = vmatpush.bf16.msra.mxu1 %v3679_v22 }
 0x75a   : > { %2554 = vmatpush.bf16.msra.mxu3 %v3687_v39  ;;  %2568 = vmatpush.bf16.msrb.mxu2 %v3695_v40 }
 0x75d   : > { %2527 = vmatpush.bf16.msra.mxu0 %v3670_v41  ;;  %2541 = vmatpush.bf16.msra.mxu1 %v3678_v42  ;;  %v981_v41 = vperm.slane %v4275_v0, 4  ;;  %v982_v42 = vperm.slane %v4275_v0, 5 }
 0x75e   : > { %2555 = vmatpush.bf16.msra.mxu3 %v3686_v44  ;;  %2569 = vmatpush.bf16.msrb.mxu2 %v3694_v45 }
 0x761   : > { %2528 = vmatpush.bf16.msra.mxu0 %v3669_v43  ;;  %2542 = vmatpush.bf16.msra.mxu1 %v3677_v11  ;;  %v3720_v43 = vld [vmem:[%s3988_s4 + $0x2b8] sm:$0xff] }
 0x762   : > { %2556 = vmatpush.bf16.msra.mxu3 %v3685_v15  ;;  %2570 = vmatpush.bf16.msrb.mxu2 %v3693_v48  ;;  %v3728_v11 = vld [vmem:[%s3988_s4 + $0x2f8] sm:$0xff] }
 0x765   : > { %2529 = vmatpush.bf16.msra.mxu0 %v3668_v46  ;;  %2543 = vmatpush.bf16.msra.mxu1 %v3676_v47  ;;  %v3702_v46 = vld [vmem:[%s3988_s4 + $0x228] sm:$0xff] }
 0x766   : > { %2557 = vmatpush.bf16.msra.mxu3 %v3684_v5  ;;  %2571 = vmatpush.bf16.msrb.mxu2 %v3692_v52  ;;  %v3710_v47 = vld [vmem:[%s3988_s4 + $0x268] sm:$0xff]  ;;  %v3719_v5 = vld [vmem:[%s3988_s4 + $0x2b0] sm:$0xff] }
 0x767   : > { %v3727_v52 = vld [vmem:[%s3988_s4 + $0x2f0] sm:$0xff] }
 0x769   : > { %2530 = vmatpush.bf16.msra.mxu0 %v3667_v4  ;;  %2544 = vmatpush.bf16.msra.mxu1 %v3675_v50 }
 0x76a   : > { %2558 = vmatpush.bf16.msra.mxu3 %v3683_v55  ;;  %2572 = vmatpush.bf16.msrb.mxu2 %v3691_v57  ;;  %v3701_v55 = vld [vmem:[%s3988_s4 + $0x220] sm:$0xff] }
 0x76b   : > { %v3709_v57 = vld [vmem:[%s3988_s4 + $0x260] sm:$0xff] }
 0x76d   : > { %2531 = vmatpush.bf16.msra.mxu0 %v3666_v53  ;;  %2545 = vmatpush.bf16.msra.mxu1 %v3674_v54 }
 0x76e   : > { %2559 = vmatpush.bf16.msra.mxu3 %v3682_v60  ;;  %2573 = vmatpush.bf16.msrb.mxu2 %v3690_v61  ;;  %v983_v60 = vperm.slane %v4275_v0, 6  ;;  %v984_v61 = vperm.slane %v4275_v0, 7 }
 0x771   : > { %2532 = vmatpush.bf16.msra.mxu0 %v3665_v58  ;;  %2546 = vmatpush.bf16.msra.mxu1 %v3673_v59 }
 0x772   : > { %2560 = vmatpush.bf16.msra.mxu3 %v3681_v62  ;;  %2574 = vmatpush.bf16.msrb.mxu2 %v3689_v63 }
 0x790   : > { %v1181_v1 = vpop.f32.mrf.mxu0  ;;  %v1195_v2 = vpop.f32.mrf.mxu1 }
 0x791   : > { %v1182_v6 = vadd.f32 %v1181_v1, %v977_v14  ;;  %v1196_v7 = vadd.f32 %v1195_v2, %v978_v3 }
 0x793   : > { %v1396_v20 = vmax.f32 %v1182_v6, 0.0  ;;  %v1397_v56 = vmax.f32 %v1196_v7, 0.0 }
 0x797   : > { %v1209_v8 = vpop.f32.mrf.mxu3  ;;  %v1223_v9 = vpop.f32.mrf.mxu2 }
 0x798   : > { %v1183_v10 = vpop.f32.mrf.mxu0  ;;  %v1197_v12 = vpop.f32.mrf.mxu1  ;;  %v1210_v28 = vadd.f32 %v1209_v8, %v979_v16  ;;  %v1224_v29 = vadd.f32 %v1223_v9, %v980_v30  ;;  %v3700_v8 = vld [vmem:[%s3988_s4 + $0x218] sm:$0xff] }
 0x799   : > { %v1184_v13 = vadd.f32 %v1183_v10, %v977_v14  ;;  %v1198_v51 = vadd.f32 %v1197_v12, %v978_v3  ;;  %v3718_v14 = vld [vmem:[%s3988_s4 + $0x2a8] sm:$0xff]  ;;  %v3708_v9 = vld [vmem:[%s3988_s4 + $0x258] sm:$0xff] }
 0x79a   : > { %v1398_v38 = vmax.f32 %v1210_v28, 0.0  ;;  %v1399_v22 = vmax.f32 %v1224_v29, 0.0  ;;  %v3726_v3 = vld [vmem:[%s3988_s4 + $0x2e8] sm:$0xff] }
 0x79b   : > { %v1412_v23 = vmax.f32 %v1184_v13, 0.0  ;;  %v1413_v24 = vmax.f32 %v1198_v51, 0.0  ;;  %v3717_v51 = vld [vmem:[%s3988_s4 + $0x2a0] sm:$0xff] }
 0x79d   : > { %v1428_v27 = vpack.c.bf16 %v1412_v23, %v1396_v20  ;;  %v1429_v21 = vpack.c.bf16 %v1413_v24, %v1397_v56  ;;  %v4304_v56 = vld [vmem:[%s3982_s21 + $0x8] sm:$0xff] }
 0x79f   : > { %v1211_v31 = vpop.f32.mrf.mxu3  ;;  %v1225_v32 = vpop.f32.mrf.mxu2  ;;  %2477 = vmatmul.bf16.vlgmr.msrb.gmra.mxu0 %v1428_v27  ;;  %2491 = vmatmul.bf16.vlgmr.msrb.gmra.mxu1 %v1429_v21 }
 0x7a0   : > { %v1212_v33 = vadd.f32 %v1211_v31, %v979_v16  ;;  %v1226_v34 = vadd.f32 %v1225_v32, %v980_v30  ;;  %2581 = vmatpush.bf16.msrb.mxu0 %v3704_v25  ;;  %2595 = vmatpush.bf16.msrb.mxu1 %v3712_v26  ;;  %v1237_v18 = vpop.f32.mrf.mxu0  ;;  %v1251_v35 = vpop.f32.mrf.mxu1  ;;  %v3725_v16 = vld [vmem:[%s3988_s4 + $0x2e0] sm:$0xff]  ;;  %v3699_v25 = vld [vmem:[%s3988_s4 + $0x210] sm:$0xff]  ;;  %v985_v31 = vperm.slane %v4304_v56, 0  ;;  %v986_v32 = vperm.slane %v4304_v56, 1 }
 0x7a1   : > { %v1238_v15 = vadd.f32 %v1237_v18, %v981_v41  ;;  %v1252_v48 = vadd.f32 %v1251_v35, %v982_v42  ;;  %v3707_v26 = vld [vmem:[%s3988_s4 + $0x250] sm:$0xff] }
 0x7a2   : > { %v1414_v39 = vmax.f32 %v1212_v33, 0.0  ;;  %v1415_v40 = vmax.f32 %v1226_v34, 0.0  ;;  %v3716_v33 = vld [vmem:[%s3988_s4 + $0x298] sm:$0xff] }
 0x7a3   : > { %v1400_v62 = vmax.f32 %v1238_v15, 0.0  ;;  %v1401_v63 = vmax.f32 %v1252_v48, 0.0  ;;  %v3724_v34 = vld [vmem:[%s3988_s4 + $0x2d8] sm:$0xff]  ;;  %v987_v15 = vperm.slane %v4304_v56, 2  ;;  %v988_v48 = vperm.slane %v4304_v56, 3 }
 0x7a4   : > { %v1430_v44 = vpack.c.bf16 %v1414_v39, %v1398_v38  ;;  %v1431_v45 = vpack.c.bf16 %v1415_v40, %v1399_v22  ;;  %2582 = vmatpush.bf16.msrb.mxu0 %v3703_v36  ;;  %2596 = vmatpush.bf16.msrb.mxu1 %v3711_v37  ;;  %v3698_v36 = vld [vmem:[%s3988_s4 + $0x208] sm:$0xff] }
 0x7a5   : > { %v3706_v37 = vld [vmem:[%s3988_s4 + $0x248] sm:$0xff] }
 0x7a6   : > { %2505 = vmatmul.bf16.vlgmr.msrb.gmra.mxu3 %v1430_v44  ;;  %2519 = vmatmul.bf16.vlgmr.msra.gmra.mxu2 %v1431_v45 }
 0x7a7   : > { %2609 = vmatpush.bf16.msrb.mxu3 %v3720_v43  ;;  %2623 = vmatpush.bf16.msra.mxu2 %v3728_v11  ;;  %v1265_v4 = vpop.f32.mrf.mxu3  ;;  %v1279_v50 = vpop.f32.mrf.mxu2 }
 0x7a8   : > { %2583 = vmatpush.bf16.msrb.mxu0 %v3702_v46  ;;  %2597 = vmatpush.bf16.msrb.mxu1 %v3710_v47  ;;  %v1239_v53 = vpop.f32.mrf.mxu0  ;;  %v1253_v54 = vpop.f32.mrf.mxu1  ;;  %v1266_v10 = vadd.f32 %v1265_v4, %v983_v60  ;;  %v1280_v12 = vadd.f32 %v1279_v50, %v984_v61  ;;  %v3697_v46 = vld [vmem:[%s3988_s4 + $0x200] sm:$0xff]  ;;  %v3736_v4 = vld [vmem:[%s3988_s4 + $0x338] sm:$0xff] }
 0x7a9   : > { %v1240_v58 = vadd.f32 %v1239_v53, %v981_v41  ;;  %v1254_v59 = vadd.f32 %v1253_v54, %v982_v42  ;;  %v3715_v41 = vld [vmem:[%s3988_s4 + $0x290] sm:$0xff]  ;;  %v3705_v47 = vld [vmem:[%s3988_s4 + $0x240] sm:$0xff]  ;;  %v3744_v50 = vld [vmem:[%s3988_s4 + $0x378] sm:$0xff] }
 0x7aa   : > { %v1402_v27 = vmax.f32 %v1266_v10, 0.0  ;;  %v1403_v21 = vmax.f32 %v1280_v12, 0.0  ;;  %v3723_v42 = vld [vmem:[%s3988_s4 + $0x2d0] sm:$0xff] }
 0x7ab   : > { %v1416_v1 = vmax.f32 %v1240_v58, 0.0  ;;  %v1417_v2 = vmax.f32 %v1254_v59, 0.0  ;;  %2610 = vmatpush.bf16.msrb.mxu3 %v3719_v5  ;;  %2624 = vmatpush.bf16.msra.mxu2 %v3727_v52 }
 0x7ac   : > { %2584 = vmatpush.bf16.msrb.mxu0 %v3701_v55  ;;  %2598 = vmatpush.bf16.msrb.mxu1 %v3709_v57  ;;  %v3714_v55 = vld [vmem:[%s3988_s4 + $0x288] sm:$0xff] }
 0x7ad   : > { %v1432_v6 = vpack.c.bf16 %v1416_v1, %v1400_v62  ;;  %v1433_v7 = vpack.c.bf16 %v1417_v2, %v1401_v63  ;;  %v3722_v57 = vld [vmem:[%s3988_s4 + $0x2c8] sm:$0xff]  ;;  %v3735_v62 = vld [vmem:[%s3988_s4 + $0x330] sm:$0xff] }
 0x7ae   : > { %v3743_v63 = vld [vmem:[%s3988_s4 + $0x370] sm:$0xff] }
 0x7af   : > { %2611 = vmatpush.bf16.msrb.mxu3 %v3718_v14  ;;  %2625 = vmatpush.bf16.msra.mxu2 %v3726_v3  ;;  %v1267_v0 = vpop.f32.mrf.mxu3  ;;  %v1281_v13 = vpop.f32.mrf.mxu2  ;;  %v3713_v14 = vld [vmem:[%s3988_s4 + $0x280] sm:$0xff] }
 0x7b0   : > { %v1268_v30 = vadd.f32 %v1267_v0, %v983_v60  ;;  %v1282_v20 = vadd.f32 %v1281_v13, %v984_v61  ;;  %2533 = vmatmul.bf16.vlgmr.msra.gmra.mxu0 %v1432_v6  ;;  %2547 = vmatmul.bf16.vlgmr.msra.gmra.mxu1 %v1433_v7  ;;  %v1293_v23 = vpop.f32.mrf.mxu0  ;;  %v1307_v24 = vpop.f32.mrf.mxu1  ;;  %v3721_v3 = vld [vmem:[%s3988_s4 + $0x2c0] sm:$0xff] }
 0x7b1   : > { %2585 = vmatpush.bf16.msrb.mxu0 %v3700_v8  ;;  %2599 = vmatpush.bf16.msrb.mxu1 %v3708_v9  ;;  %v1294_v38 = vadd.f32 %v1293_v23, %v985_v31  ;;  %v1308_v22 = vadd.f32 %v1307_v24, %v986_v32  ;;  %v3752_v8 = vld [vmem:[%s3988_s4 + $0x3b8] sm:$0xff]  ;;  %v3751_v23 = vld [vmem:[%s3988_s4 + $0x3b0] sm:$0xff] }
 0x7b2   : > { %v1418_v28 = vmax.f32 %v1268_v30, 0.0  ;;  %v1419_v29 = vmax.f32 %v1282_v20, 0.0  ;;  %v3760_v9 = vld [vmem:[%s3988_s4 + $0x3f8] sm:$0xff]  ;;  %v3759_v24 = vld [vmem:[%s3988_s4 + $0x3f0] sm:$0xff] }
 0x7b3   : > { %2612 = vmatpush.bf16.msrb.mxu3 %v3717_v51  ;;  %2626 = vmatpush.bf16.msra.mxu2 %v3725_v16  ;;  %v1404_v5 = vmax.f32 %v1294_v38, 0.0  ;;  %v1405_v52 = vmax.f32 %v1308_v22, 0.0  ;;  %v3734_v51 = vld [vmem:[%s3988_s4 + $0x328] sm:$0xff] }
 0x7b4   : > { %v1434_v18 = vpack.c.bf16 %v1418_v28, %v1402_v27  ;;  %v1435_v35 = vpack.c.bf16 %v1419_v29, %v1403_v21  ;;  %v3742_v16 = vld [vmem:[%s3988_s4 + $0x368] sm:$0xff]  ;;  %v3733_v27 = vld [vmem:[%s3988_s4 + $0x320] sm:$0xff] }
 0x7b5   : > { %2586 = vmatpush.bf16.msrb.mxu0 %v3699_v25  ;;  %2600 = vmatpush.bf16.msrb.mxu1 %v3707_v26  ;;  %v3741_v21 = vld [vmem:[%s3988_s4 + $0x360] sm:$0xff]  ;;  %v3750_v28 = vld [vmem:[%s3988_s4 + $0x3a8] sm:$0xff] }
 0x7b6   : > { %2561 = vmatmul.bf16.vlgmr.msra.gmra.mxu3 %v1434_v18  ;;  %2575 = vmatmul.bf16.vlgmr.msrb.gmra.mxu2 %v1435_v35  ;;  %v3758_v29 = vld [vmem:[%s3988_s4 + $0x3e8] sm:$0xff]  ;;  %v3749_v18 = vld [vmem:[%s3988_s4 + $0x3a0] sm:$0xff] }
 0x7b7   : > { %2613 = vmatpush.bf16.msrb.mxu3 %v3716_v33  ;;  %2627 = vmatpush.bf16.msra.mxu2 %v3724_v34  ;;  %v1321_v39 = vpop.f32.mrf.mxu3  ;;  %v1335_v40 = vpop.f32.mrf.mxu2  ;;  %v3757_v35 = vld [vmem:[%s3988_s4 + $0x3e0] sm:$0xff] }
 0x7b8   : > { %v1295_v43 = vpop.f32.mrf.mxu0  ;;  %v1309_v11 = vpop.f32.mrf.mxu1  ;;  %v1322_v60 = vadd.f32 %v1321_v39, %v987_v15  ;;  %v1336_v61 = vadd.f32 %v1335_v40, %v988_v48  ;;  %v3748_v39 = vld [vmem:[%s3988_s4 + $0x398] sm:$0xff] }
 0x7b9   : > { %2587 = vmatpush.bf16.msrb.mxu0 %v3698_v36  ;;  %2601 = vmatpush.bf16.msrb.mxu1 %v3706_v37  ;;  %v1296_v44 = vadd.f32 %v1295_v43, %v985_v31  ;;  %v1310_v45 = vadd.f32 %v1309_v11, %v986_v32  ;;  %v3732_v31 = vld [vmem:[%s3988_s4 + $0x318] sm:$0xff]  ;;  %v3731_v36 = vld [vmem:[%s3988_s4 + $0x310] sm:$0xff]  ;;  %v3730_v43 = vld [vmem:[%s3988_s4 + $0x308] sm:$0xff] }
 0x7ba   : > { %v1406_v10 = vmax.f32 %v1322_v60, 0.0  ;;  %v1407_v12 = vmax.f32 %v1336_v61, 0.0  ;;  %v3740_v32 = vld [vmem:[%s3988_s4 + $0x358] sm:$0xff]  ;;  %v3739_v37 = vld [vmem:[%s3988_s4 + $0x350] sm:$0xff]  ;;  %v3738_v11 = vld [vmem:[%s3988_s4 + $0x348] sm:$0xff] }
 0x7bb   : > { %v1420_v53 = vmax.f32 %v1296_v44, 0.0  ;;  %v1421_v54 = vmax.f32 %v1310_v45, 0.0  ;;  %2614 = vmatpush.bf16.msrb.mxu3 %v3715_v41  ;;  %2628 = vmatpush.bf16.msra.mxu2 %v3723_v42  ;;  %v3756_v40 = vld [vmem:[%s3988_s4 + $0x3d8] sm:$0xff]  ;;  %v989_v41 = vperm.slane %v4304_v56, 4  ;;  %v990_v42 = vperm.slane %v4304_v56, 5 }
 0x7bd   : > { %v1436_v58 = vpack.c.bf16 %v1420_v53, %v1404_v5  ;;  %v1437_v59 = vpack.c.bf16 %v1421_v54, %v1405_v52  ;;  %2588 = vmatpush.bf16.msrb.mxu0 %v3697_v46  ;;  %2602 = vmatpush.bf16.msrb.mxu1 %v3705_v47  ;;  %v3747_v46 = vld [vmem:[%s3988_s4 + $0x390] sm:$0xff]  ;;  %v3729_v5 = vld [vmem:[%s3988_s4 + $0x300] sm:$0xff]  ;;  %v991_v53 = vperm.slane %v4304_v56, 6  ;;  %v992_v54 = vperm.slane %v4304_v56, 7 }
 0x7be   : > { %v3755_v47 = vld [vmem:[%s3988_s4 + $0x3d0] sm:$0xff]  ;;  %v3737_v52 = vld [vmem:[%s3988_s4 + $0x340] sm:$0xff] }
 0x7bf   : > { %2615 = vmatpush.bf16.msrb.mxu3 %v3714_v55  ;;  %2629 = vmatpush.bf16.msra.mxu2 %v3722_v57  ;;  %v1323_v1 = vpop.f32.mrf.mxu3  ;;  %v1337_v2 = vpop.f32.mrf.mxu2  ;;  %v3745_v56 = vld [vmem:[%s3988_s4 + $0x380] sm:$0xff] }
 0x7c0   : > { %v1324_v6 = vadd.f32 %v1323_v1, %v987_v15  ;;  %v1338_v7 = vadd.f32 %v1337_v2, %v988_v48  ;;  %2589 = vmatmul.bf16.vlgmr.msrb.gmra.mxu0 %v1436_v58  ;;  %2603 = vmatmul.bf16.vlgmr.msrb.gmra.mxu1 %v1437_v59  ;;  %v1349_v25 = vpop.f32.mrf.mxu0  ;;  %v1363_v26 = vpop.f32.mrf.mxu1  ;;  %v3746_v58 = vld [vmem:[%s3988_s4 + $0x388] sm:$0xff] }
 0x7c1   : > { %2637 = vmatpush.bf16.msra.mxu0 %v3736_v4  ;;  %2651 = vmatpush.bf16.msra.mxu1 %v3744_v50  ;;  %v1350_v15 = vadd.f32 %v1349_v25, %v989_v41  ;;  %v1364_v48 = vadd.f32 %v1363_v26, %v990_v42  ;;  %v3754_v59 = vld [vmem:[%s3988_s4 + $0x3c8] sm:$0xff] }
 0x7c2   : > { %v1422_v0 = vmax.f32 %v1324_v6, 0.0  ;;  %v1423_v13 = vmax.f32 %v1338_v7, 0.0  ;;  %v3753_v6 = vld [vmem:[%s3988_s4 + $0x3c0] sm:$0xff] }
 0x7c3   : > { %2616 = vmatpush.bf16.msrb.mxu3 %v3713_v14  ;;  %2630 = vmatpush.bf16.msra.mxu2 %v3721_v3  ;;  %v1408_v60 = vmax.f32 %v1350_v15, 0.0  ;;  %v1409_v61 = vmax.f32 %v1364_v48, 0.0 }
 0x7c4   : > { %v1438_v30 = vpack.c.bf16 %v1422_v0, %v1406_v10  ;;  %v1439_v20 = vpack.c.bf16 %v1423_v13, %v1407_v12 }
 0x7c5   : > { %2638 = vmatpush.bf16.msra.mxu0 %v3735_v62  ;;  %2652 = vmatpush.bf16.msra.mxu1 %v3743_v63 }
 0x7c6   : > { %2617 = vmatmul.bf16.vlgmr.msrb.gmra.mxu3 %v1438_v30  ;;  %2631 = vmatmul.bf16.vlgmr.msra.gmra.mxu2 %v1439_v20 }
 0x7c7   : > { %2665 = vmatpush.bf16.msra.mxu3 %v3752_v8  ;;  %2679 = vmatpush.bf16.msrb.mxu2 %v3760_v9  ;;  %v1377_v33 = vpop.f32.mrf.mxu3  ;;  %v1391_v34 = vpop.f32.mrf.mxu2 }
 0x7c8   : > { %v1351_v38 = vpop.f32.mrf.mxu0  ;;  %v1365_v22 = vpop.f32.mrf.mxu1  ;;  %v1378_v1 = vadd.f32 %v1377_v33, %v991_v53  ;;  %v1392_v2 = vadd.f32 %v1391_v34, %v992_v54 }
 0x7c9   : > { %2639 = vmatpush.bf16.msra.mxu0 %v3734_v51  ;;  %2653 = vmatpush.bf16.msra.mxu1 %v3742_v16  ;;  %v1352_v44 = vadd.f32 %v1351_v38, %v989_v41  ;;  %v1366_v45 = vadd.f32 %v1365_v22, %v990_v42 }
 0x7ca   : > { %v1410_v9 = vmax.f32 %v1378_v1, 0.0  ;;  %v1411_v10 = vmax.f32 %v1392_v2, 0.0 }
 0x7cb   : > { %2666 = vmatpush.bf16.msra.mxu3 %v3751_v23  ;;  %2680 = vmatpush.bf16.msrb.mxu2 %v3759_v24  ;;  %v1424_v55 = vmax.f32 %v1352_v44, 0.0  ;;  %v1425_v57 = vmax.f32 %v1366_v45, 0.0  ;;  %v4361_v24 = vld [vmem:[%s3972_s30] sm:$0x3f] }
 0x7cc   : > { %v1700_v25 = vperm.slane %v4361_v24, 1 }
 0x7cd   : > { %2640 = vmatpush.bf16.msra.mxu0 %v3733_v27  ;;  %2654 = vmatpush.bf16.msra.mxu1 %v3741_v21  ;;  %v1440_v14 = vpack.c.bf16 %v1424_v55, %v1408_v60  ;;  %v1441_v3 = vpack.c.bf16 %v1425_v57, %v1409_v61 }
 0x7cf   : > { %2667 = vmatpush.bf16.msra.mxu3 %v3750_v28  ;;  %2681 = vmatpush.bf16.msrb.mxu2 %v3758_v29  ;;  %v1379_v4 = vpop.f32.mrf.mxu3  ;;  %v1393_v50 = vpop.f32.mrf.mxu2 }
 0x7d0   : > { %v1380_v62 = vadd.f32 %v1379_v4, %v991_v53  ;;  %v1394_v63 = vadd.f32 %v1393_v50, %v992_v54 }
 0x7d1   : > { %2641 = vmatpush.bf16.msra.mxu0 %v3732_v31  ;;  %2655 = vmatpush.bf16.msra.mxu1 %v3740_v32 }
 0x7d2   : > { %v1426_v7 = vmax.f32 %v1380_v62, 0.0  ;;  %v1427_v8 = vmax.f32 %v1394_v63, 0.0 }
 0x7d3   : > { %2668 = vmatpush.bf16.msra.mxu3 %v3749_v18  ;;  %2682 = vmatpush.bf16.msrb.mxu2 %v3757_v35 }
 0x7d4   : > { %v1442_v12 = vpack.c.bf16 %v1426_v7, %v1410_v9  ;;  %v1443_v0 = vpack.c.bf16 %v1427_v8, %v1411_v10 }
 0x7d5   : > { %2642 = vmatpush.bf16.msra.mxu0 %v3731_v36  ;;  %2656 = vmatpush.bf16.msra.mxu1 %v3739_v37 }
 0x7d7   : > { %2669 = vmatpush.bf16.msra.mxu3 %v3748_v39  ;;  %2683 = vmatpush.bf16.msrb.mxu2 %v3756_v40 }
 0x7d9   : > { %2643 = vmatpush.bf16.msra.mxu0 %v3730_v43  ;;  %2657 = vmatpush.bf16.msra.mxu1 %v3738_v11 }
 0x7db   : > { %2670 = vmatpush.bf16.msra.mxu3 %v3747_v46  ;;  %2684 = vmatpush.bf16.msrb.mxu2 %v3755_v47 }
 0x7dd   : > { %2644 = vmatpush.bf16.msra.mxu0 %v3729_v5  ;;  %2658 = vmatpush.bf16.msra.mxu1 %v3737_v52 }
 0x7df   : > { %2671 = vmatpush.bf16.msra.mxu3 %v3746_v58  ;;  %2685 = vmatpush.bf16.msrb.mxu2 %v3754_v59 }
 0x7e0   : > { %2645 = vmatmul.bf16.vlgmr.msra.gmra.mxu0 %v1440_v14  ;;  %2659 = vmatmul.bf16.vlgmr.msra.gmra.mxu1 %v1441_v3 }
 0x7e3   : > { %2672 = vmatpush.bf16.msra.mxu3 %v3745_v56  ;;  %2686 = vmatpush.bf16.msrb.mxu2 %v3753_v6 }
 0x7e6   : > { %2673 = vmatmul.bf16.vlgmr.msra.gmra.mxu3 %v1442_v12  ;;  %2687 = vmatmul.bf16.vlgmr.msrb.gmra.mxu2 %v1443_v0 }
 0x81c   : > { %v2478_v13 = vpop.f32.mrf.mxu0  ;;  %v2492_v51 = vpop.f32.mrf.mxu1 }
 0x81d   : > { %v2479_v28 = vadd.f32 %v2478_v13, %v1700_v25 }
 0x81f   : > { %v2493_v31 = vadd.f32 %v2492_v51, %v2479_v28 }
 0x824   : > { %v2480_v16 = vpop.f32.mrf.mxu0  ;;  %v2494_v23 = vpop.f32.mrf.mxu1 }
 0x825   : > { %v2481_v35 = vadd.f32 %v2480_v16, %v1700_v25 }
 0x827   : > { %v2495_v37 = vadd.f32 %v2494_v23, %v2481_v35 }
 0x829   : > { %v2506_v30 = vpop.f32.mrf.mxu3  ;;  %v2520_v20 = vpop.f32.mrf.mxu2 }
 0x82a   : > { %v2507_v32 = vadd.f32 %v2506_v30, %v2493_v31 }
 0x82c   : > { %v2521_v36 = vadd.f32 %v2520_v20, %v2507_v32 }
 0x82d   : > { %v2534_v26 = vpop.f32.mrf.mxu0  ;;  %v2548_v29 = vpop.f32.mrf.mxu1 }
 0x82e   : > { %v2535_v22 = vadd.f32 %v2534_v26, %v2521_v36 }
 0x830   : > { %v2549_v43 = vadd.f32 %v2548_v29, %v2535_v22 }
 0x831   : > { %v2508_v27 = vpop.f32.mrf.mxu3  ;;  %v2522_v21 = vpop.f32.mrf.mxu2 }
 0x832   : > { %v2509_v39 = vadd.f32 %v2508_v27, %v2495_v37 }
 0x834   : > { %v2523_v11 = vadd.f32 %v2522_v21, %v2509_v39 }
 0x835   : > { %v2536_v33 = vpop.f32.mrf.mxu0  ;;  %v2550_v38 = vpop.f32.mrf.mxu1 }
 0x836   : > { %v2537_v45 = vadd.f32 %v2536_v33, %v2523_v11 }
 0x838   : > { %v2551_v15 = vadd.f32 %v2550_v38, %v2537_v45 }
 0x839   : > { %v2562_v34 = vpop.f32.mrf.mxu3  ;;  %v2576_v18 = vpop.f32.mrf.mxu2 }
 0x83a   : > { %v2563_v44 = vadd.f32 %v2562_v34, %v2549_v43 }
 0x83c   : > { %v2577_v47 = vadd.f32 %v2576_v18, %v2563_v44 }
 0x83d   : > { %v2590_v40 = vpop.f32.mrf.mxu0  ;;  %v2604_v46 = vpop.f32.mrf.mxu1 }
 0x83e   : > { %v2591_v5 = vadd.f32 %v2590_v40, %v2577_v47  ;;  %v2739_v47 = vperm.slane %v4361_v24, 4 }
 0x840   : > { %v2605_v53 = vadd.f32 %v2604_v46, %v2591_v5 }
 0x841   : > { %v2564_v41 = vpop.f32.mrf.mxu3  ;;  %v2578_v42 = vpop.f32.mrf.mxu2 }
 0x842   : > { %v2565_v52 = vadd.f32 %v2564_v41, %v2551_v15 }
 0x844   : > { %v2579_v54 = vadd.f32 %v2578_v42, %v2565_v52 }
 0x845   : > { %v2592_v48 = vpop.f32.mrf.mxu0  ;;  %v2606_v55 = vpop.f32.mrf.mxu1 }
 0x846   : > { %v2593_v59 = vadd.f32 %v2592_v48, %v2579_v54 }
 0x848   : > { %v2607_v63 = vadd.f32 %v2606_v55, %v2593_v59 }
 0x849   : > { %v2618_v4 = vpop.f32.mrf.mxu3  ;;  %v2632_v50 = vpop.f32.mrf.mxu2 }
 0x84a   : > { %v2619_v57 = vadd.f32 %v2618_v4, %v2605_v53  ;;  %v2742_v4 = vperm.slane %v4361_v24, 5 }
 0x84c   : > { %v2633_v62 = vadd.f32 %v2632_v50, %v2619_v57 }
 0x851   : > { %v2620_v60 = vpop.f32.mrf.mxu3  ;;  %v2634_v61 = vpop.f32.mrf.mxu2 }
 0x852   : > { %v2621_v14 = vadd.f32 %v2620_v60, %v2607_v63 }
 0x854   : > { %v2635_v8 = vadd.f32 %v2634_v61, %v2621_v14 }
 0x85d   : > { %v2646_v58 = vpop.f32.mrf.mxu0  ;;  %v2660_v2 = vpop.f32.mrf.mxu1 }
 0x85e   : > { %v2647_v1 = vadd.f32 %v2646_v58, %v2633_v62 }
 0x860   : > { %v2661_v3 = vadd.f32 %v2660_v2, %v2647_v1 }
 0x865   : > { %v2648_v56 = vpop.f32.mrf.mxu0  ;;  %v2662_v13 = vpop.f32.mrf.mxu1 }
 0x866   : > { %v2649_v10 = vadd.f32 %v2648_v56, %v2635_v8 }
 0x868   : > { %v2663_v51 = vadd.f32 %v2662_v13, %v2649_v10 }
 0x869   : > { %v2674_v6 = vpop.f32.mrf.mxu3  ;;  %v2688_v7 = vpop.f32.mrf.mxu2 }
 0x86a   : > { %v2675_v9 = vadd.f32 %v2674_v6, %v2661_v3 }
 0x86c   : > { %v2689_v12 = vadd.f32 %v2688_v7, %v2675_v9 }
 0x86e   : > { %v2693_v0 = vadd.f32 %v2689_v12, %v4143_v17 }
 0x870   : > { %v2695_v16 = vsel %vm490_vm1, %v2693_v0, 0.0 }
 0x871   : > { %v2676_v30 = vpop.f32.mrf.mxu3  ;;  %2696 = vadd.xlane.f32.xlu2 %v2695_v16  ;;  %v2690_v23 = vpop.f32.mrf.mxu2 }
 0x872   : > { %v2677_v20 = vadd.f32 %v2676_v30, %v2663_v51 }
 0x874   : > { %v2691_v25 = vadd.f32 %v2690_v23, %v2677_v20 }
 0x876   : > { %v2694_v26 = vadd.f32 %v2691_v25, %v4145_v19 }
 0x878   : > { %v2698_v27 = vsel %vm490_vm1, %v2694_v26, 0.0 }
 0x879   : > { %2699 = vadd.xlane.f32.xlu0 %v2698_v27 }
 0x8e4   : > { %v2697_v21 = vpop.xlane.xlu2 %2696 }
 0x8e5   : > { %v2701_v28 = vmul.f32 %v2697_v21, %v4086_v49 }
 0x8e7   : > { %v2703_v29 = vsub.f32 %v2693_v0, %v2701_v28 }
 0x8e9   : > { %v2705_v31 = vmul.f32 %v2703_v29, %v2703_v29 }
 0x8eb   : > { %v2707_v17 = vsel %vm490_vm1, %v2705_v31, 0.0 }
 0x8ec   : > { %v2700_v32 = vpop.xlane.xlu0 %2699  ;;  %2708 = vadd.xlane.f32.xlu2 %v2707_v17 }
 0x8ed   : > { %v2702_v33 = vmul.f32 %v2700_v32, %v4086_v49 }
 0x8ef   : > { %v2704_v34 = vsub.f32 %v2694_v26, %v2702_v33 }
 0x8f1   : > { %v2706_v18 = vmul.f32 %v2704_v34, %v2704_v34 }
 0x8f3   : > { %v2710_v35 = vsel %vm490_vm1, %v2706_v18, 0.0 }
 0x8f4   : > { %2711 = vadd.xlane.f32.xlu1 %v2710_v35 }
 0x95f   : > { %v2709_v19 = vpop.xlane.xlu2 %2708 }
 0x960   : > { %v2713_v36 = vmul.f32 %v2709_v19, %v4086_v49 }
 0x962   : > { %v2715_v37 = vadd.f32 1e-05, %v2713_v36 }
 0x964   : > { %3827 = vrsqrt.f32 %v2715_v37  ;;  %vm2723_vm13 = vweird.f32 %v2715_v37 }
 0x967   : > { %v2712_v38 = vpop.xlane.xlu1 %2711 }
 0x968   : > { %v2714_v22 = vmul.f32 %v2712_v38, %v4086_v49 }
 0x96a   : > { %v3828_v39 = vpop.eup %3827  ;;  %v2716_v40 = vadd.f32 1e-05, %v2714_v22 }
 0x96b   : > { %v2718_v41 = vmul.f32 %v3828_v39, %v2715_v37  ;;  %vm2724_vm12 = vweird.f32 %v3828_v39 }
 0x96c   : > { %3829 = vrsqrt.f32 %v2716_v40  ;;  %vm2725_vm14 = vmor %vm2723_vm13, %vm2724_vm12  ;;  %vm2733_vm0 = vweird.f32 %v2716_v40 }
 0x96d   : > { %v2719_v42 = vmul.f32 %v3828_v39, %v2718_v41 }
 0x96f   : > { %v2720_v43 = vmul.f32 0.5, %v2719_v42 }
 0x971   : > { %v2721_v11 = vsub.f32 1.5, %v2720_v43 }
 0x972   : > { %v3830_v44 = vpop.eup %3829 }
 0x973   : > { %v2722_v45 = vmul.f32 %v3828_v39, %v2721_v11  ;;  %v2728_v46 = vmul.f32 %v3830_v44, %v2716_v40  ;;  %vm2734_vm15 = vweird.f32 %v3830_v44 }
 0x974   : > { %vm2735_vm2 = vmor %vm2733_vm0, %vm2734_vm15 }
 0x975   : > { %v2726_v15 = vsel %vm2725_vm14, %v3828_v39, %v2722_v45  ;;  %v2729_v48 = vmul.f32 %v3830_v44, %v2728_v46 }
 0x976   : > { %v2737_v49 = vmul.f32 %v2726_v15, %v2703_v29 }
 0x977   : > { %v2730_v50 = vmul.f32 0.5, %v2729_v48 }
 0x978   : > { %v2740_v5 = vmul.f32 %v2739_v47, %v2737_v49 }
 0x979   : > { %v2731_v52 = vsub.f32 1.5, %v2730_v50 }
 0x97a   : > { %v2743_v53 = vadd.f32 %v2742_v4, %v2740_v5 }
 0x97b   : > { %v2732_v54 = vmul.f32 %v3830_v44, %v2731_v52 }
 0x97c   : > { %2745 = vst.msk [vmem:[#allocation2] sm:$0xff] %vm490_vm1, %v2743_v53 }
 0x97d   : > { %v2736_v55 = vsel %vm2735_vm2, %v3830_v44, %v2732_v54 }
 0x97e   : > { %v2738_v57 = vmul.f32 %v2736_v55, %v2704_v34 }
 0x980   : > { %v2741_v58 = vmul.f32 %v2739_v47, %v2738_v57  ;;  %2750 = sbr.rel (%p3589_p5) target bundleno = 2567 (0xa07), region = 68 }
 0x982   : > { %v2744_v59 = vadd.f32 %v2742_v4, %v2741_v58 }
 0x984   : > { %2746 = vst.msk [vmem:[#allocation2 + $0x8] sm:$0xff] %vm490_vm1, %v2744_v59 }
 0x985   : > { %2769 = vmatpush.msra.mxu0 %v2744_v59  ;;  %v2751_v24 = vld [vmem:[%s4392_s2] sm:$0x3]  ;;  %vm2775_vm4 = vcmask 254976  }
 0x987   : > { %2770 = vmatpush.msra.mxu0 %v2743_v53 }
 0x988   : > { %3590 = vmatmul.msk.f32.vlgmr.msra.gmra.mxu0 %vm536_vm3, %v2751_v24 }
 0xa05   : > { %v2772_v60 = vpop.f32.mrf.mxu0 }
 0xa06   : > { %2776 = vst.msk [vmem:[#allocation3] sm:$0x3] %vm2775_vm4, %v2772_v60 }
 0xa07 PF: > { %p3765_p6 = scmp.eq.s32.totalorder %s3946_s14, 1  ;;  %s3884_s30 = smov [#allocation3]  }
 0xa08   : > { %s2783_s17 = sshll.u32 %s3884_s30, 4  ;;  %s2785_s15 = sshll.u32 %s4400_s10, 4  ;;  %s2784_s17 = int_to_ptr.vmem [resolvable:$true] %s2783_s17  ;;  %s2786_s15 = int_to_ptr.hbm [resolvable:$true] %s2785_s15 }
 0xa09   : > { %3762 = dma.vmem_to_hbm [thread:$0]  (%p3765_p6), %s2784_s17, 32, %s2786_s15, [#allocation4]  }
 0xa0a   : > { %3865 = dma.done.wait (%p3765_p6), [#allocation4], 32  }
 0xa0b   : > { %3867 = vsyncadd (%p3765_p6), [#allocation4], 4294967264 }
 0xa0c PF: > { %s21_s13 = sadd.s32 1, %s3870_s13  }
 0xa0d   : > { %p18_p7 = scmp.ge.s32.totalorder %s21_s13, 4  }
 0xa0f   :  { %20 = sbr.rel (!%p18_p7) target bundleno = 4 (0x4), region = 116 }
 0xa14   :  { %2799 = vsyncpa [#allocation4], 1 }
 0xa15   :  { %2801 = vsyncpa [#allocation4 + $0x1], 1 }

</bundles_post_ra>
